<compile_context>
chip_gen: v7x
topology: tpu7x:2x2x1
jax: 0.10.0
libtpu: 0.0.40
codegen_flags: <defaults>
</compile_context>

<pallas_src>
import jax
import jax.numpy as jnp
from jax import lax
from jax.experimental import pallas as pl
from jax.experimental.pallas import tpu as pltpu


def _tree_sum(xs):
    """Balanced-tree sum (caps the dependent f32 add chain at ~log2 depth)."""
    while len(xs) > 1:
        nxt = [xs[i] + xs[i + 1] for i in range(0, len(xs) - 1, 2)]
        if len(xs) % 2:
            nxt.append(xs[-1])
        xs = nxt
    return xs[0]


def _lstm_forecast_kernel(x_ref, w_ih_ref, w_hh_ref, bias_ref, w_out_ref,
                          b_out_ref, out_ref):
    # x_ref    : (S, B, 1)  time-major input series
    # w_ih_ref : (1, 4H)    input->gates row  (g-gate cols pre-scaled by 2)
    # w_hh_ref : (H, 4H)    recurrent weights (g-gate cols pre-scaled by 2)
    # bias_ref : (1, 4H)    b_ih + b_hh       (g-gate cols pre-scaled by 2)
    # w_out_ref: (1, H)     final linear weights
    # b_out_ref: (1, 1)     final linear bias (SMEM scalar)
    # out_ref  : (B, 1)
    S, B, _ = x_ref.shape
    H = w_hh_ref.shape[0]

    # Hoist loop-invariant weights and their sublane broadcasts out of the
    # recurrence (JAX does not CSE broadcast_in_dim inside unrolled loops).
    w_ih = jnp.broadcast_to(w_ih_ref[...], (B, 4 * H))
    bias = jnp.broadcast_to(bias_ref[...], (B, 4 * H))
    w_hh = w_hh_ref[...]
    w_rows = [jnp.broadcast_to(w_hh[k:k + 1, :], (B, 4 * H)) for k in range(H)]

    h = jnp.zeros((B, H), jnp.float32)
    c = jnp.zeros((B, H), jnp.float32)

    # S is a small trace-time constant -> full static unroll.
    # TODO(synk): for long horizons switch to lax.fori_loop with a bounded
    # unroll factor (4-8) to keep the instruction stream / vreg live ranges ok.
    for t in range(S):
        # Fused input projection (input_size == 1): VPU broadcast-mul-add,
        # independent of h so it overlaps the previous step's EUP tail.
        x_t = x_ref[t]                           # (B, 1), static-index load
        z = x_t * w_ih + bias                    # (B, 4H)
        if t > 0:
            # Recurrent matvec h @ w_hh as a VPU FMA tree (h == 0 at t == 0).
            leaves = [z] + [h[:, k:k + 1] * w_rows[k] for k in range(H)]
            z = _tree_sum(leaves)
        # One full-width sigmoid covers all four gates (single EUP pass); the
        # g-gate columns were pre-scaled by 2 so tanh(x) = 2*sigmoid(2x) - 1.
        s = jax.nn.sigmoid(z)
        i_g = s[:, 0:H]
        f_g = s[:, H:2 * H]
        g_g = 2.0 * s[:, 2 * H:3 * H] - 1.0
        o_g = s[:, 3 * H:4 * H]
        # NOTE: the three 16-lane gate extractions cost ~3 mutually independent
        # XLU lane realigns per step; they overlap each other and are dominated
        # by the two EUP passes, so full-width roll tricks were not worth it.
        c = f_g * c + i_g * g_g
        h = o_g * jnp.tanh(c)

    # Final Linear(H -> 1) on VPU + one lane reduce (no MXU push/drain for a
    # 1-lane-wide result at the very end of the critical path).
    out_ref[...] = (jnp.sum(h * w_out_ref[...], axis=-1, keepdims=True)
                    + b_out_ref[0, 0])


def prepare_params(params):
    """One-time parameter packing (call once at load time, not per forward)."""
    w_ih, w_hh, b_ih, b_hh, w_lin, b_lin = params
    H = w_hh.shape[1]
    assert w_ih.shape[1] == 1, "fused input projection assumes input_size == 1"
    # Pre-scale the g-gate block by 2 so the kernel recovers tanh from the
    # single full-width sigmoid: tanh(z_g) = 2*sigmoid(2*z_g) - 1.
    scale = jnp.ones((4 * H,), jnp.float32).at[2 * H:3 * H].set(2.0)
    w_ih_row = w_ih.astype(jnp.float32).T * scale[None, :]          # (1, 4H)
    w_hh_t = w_hh.astype(jnp.float32).T * scale[None, :]            # (H, 4H)
    bias = ((b_ih + b_hh).astype(jnp.float32) * scale).reshape(1, 4 * H)
    w_out_row = w_lin.astype(jnp.float32)                           # (1, H)
    b_out = b_lin.astype(jnp.float32).reshape(1, 1)                 # (1, 1)
    return (w_ih_row, w_hh_t, bias, w_out_row, b_out)


@jax.jit
def lstm_forecast(x, packed):
    """x: (B, S, 1) float32 (batch_first), packed = prepare_params(params).

    Returns (B, 1), matching LSTMForecast.forward.
    """
    w_ih_row, w_hh_t, bias, w_out_row, b_out = packed
    B, S, I = x.shape
    assert I == 1
    # Time-major layout so the kernel indexes the leading dim per step; this is
    # a 16-element permute inside the same jitted executable (the old wrapper
    # einsum and its (S,B,4H) HBM slab round-trip are gone).
    x_tm = jnp.transpose(x.astype(jnp.float32), (1, 0, 2))          # (S, B, 1)

    # Grid-less call: all operands are a few KB and sit in VMEM in one shot.
    # TODO(synk): if B/S grow, add a ("parallel",) grid over batch tiles (>=8
    # rows) so v7x's second TensorCore is used, and tile over S before the
    # time-major slab approaches v7x's smaller (64 MiB) VMEM.
    return pl.pallas_call(
        _lstm_forecast_kernel,
        out_shape=jax.ShapeDtypeStruct((B, 1), jnp.float32),
        in_specs=[
            pl.BlockSpec(memory_space=pltpu.MemorySpace.VMEM),   # x_tm
            pl.BlockSpec(memory_space=pltpu.MemorySpace.VMEM),   # w_ih_row
            pl.BlockSpec(memory_space=pltpu.MemorySpace.VMEM),   # w_hh_t
            pl.BlockSpec(memory_space=pltpu.MemorySpace.VMEM),   # bias
            pl.BlockSpec(memory_space=pltpu.MemorySpace.VMEM),   # w_out_row
            pl.BlockSpec(memory_space=pltpu.MemorySpace.SMEM),   # b_out scalar
        ],
        out_specs=pl.BlockSpec(memory_space=pltpu.MemorySpace.VMEM),
    )(x_tm, w_ih_row, w_hh_t, bias, w_out_row, b_out)


def _reference(x, params):
    """Pure-JAX f32 reference replicating torch.nn.LSTM + Linear semantics."""
    w_ih, w_hh, b_ih, b_hh, w_lin, b_lin = params
    B, S, I = x.shape
    H = w_hh.shape[1]
    hi = jax.lax.Precision.HIGHEST

    def step(carry, x_t):
        h, c = carry
        z = (jnp.dot(x_t, w_ih.T, precision=hi)
             + jnp.dot(h, w_hh.T, precision=hi) + b_ih + b_hh)
        i = jax.nn.sigmoid(z[:, 0:H])
        f = jax.nn.sigmoid(z[:, H:2 * H])
        g = jnp.tanh(z[:, 2 * H:3 * H])
        o = jax.nn.sigmoid(z[:, 3 * H:4 * H])
        c = f * c + i * g
        h = o * jnp.tanh(c)
        return (h, c), None

    h0 = jnp.zeros((B, H), jnp.float32)
    c0 = jnp.zeros((B, H), jnp.float32)
    (h_last, _), _ = lax.scan(step, (h0, c0), jnp.transpose(x, (1, 0, 2)))
    return jnp.dot(h_last, w_lin.T, precision=hi) + b_lin


def init_params(key, input_size=1, hidden_size=16):
    """Deterministic init matching PyTorch param shapes (uniform ±1/sqrt(H))."""
    H, I = hidden_size, input_size
    k = 1.0 / jnp.sqrt(jnp.float32(H))
    keys = jax.random.split(key, 6)
    w_ih = jax.random.uniform(keys[0], (4 * H, I), jnp.float32, -k, k)
    w_hh = jax.random.uniform(keys[1], (4 * H, H), jnp.float32, -k, k)
    b_ih = jax.random.uniform(keys[2], (4 * H,), jnp.float32, -k, k)
    b_hh = jax.random.uniform(keys[3], (4 * H,), jnp.float32, -k, k)
    w_lin = jax.random.uniform(keys[4], (1, H), jnp.float32, -k, k)
    b_lin = jax.random.uniform(keys[5], (1,), jnp.float32, -k, k)
    return (w_ih, w_hh, b_ih, b_hh, w_lin, b_lin)


if __name__ == "__main__":
    key = jax.random.PRNGKey(0)
    k_x, k_p = jax.random.split(key)

    B, S, I, H = 2, 8, 1, 16
    x = jax.random.normal(k_x, (B, S, I), jnp.float32)
    params = init_params(k_p, input_size=I, hidden_size=H)
    packed = prepare_params(params)   # one-time packing, outside the hot path

    out = jax.block_until_ready(lstm_forecast(x, packed))
    ref = jax.block_until_ready(_reference(x, params))

    assert out.shape == (B, 1)
    assert jnp.allclose(out, ref, atol=1e-5, rtol=1e-5), (out, ref)
    print("KERNEL_OK")
</pallas_src>

<mosaic_0001>
module attributes {stable_mosaic.version = 11 : i64} {
  func.func @_lstm_forecast_kernel(%arg0: memref<8x2x1xf32, #tpu.memory_space<vmem>>, %arg1: memref<1x64xf32, #tpu.memory_space<vmem>>, %arg2: memref<16x64xf32, #tpu.memory_space<vmem>>, %arg3: memref<1x64xf32, #tpu.memory_space<vmem>>, %arg4: memref<1x16xf32, #tpu.memory_space<vmem>>, %arg5: memref<1x1xf32, #tpu.memory_space<smem>>, %arg6: memref<2x1xf32, #tpu.memory_space<vmem>>) attributes {dimension_semantics = [], scalar_prefetch = 0 : i64, scratch_operands = 0 : i64, tpu.core_type = #tpu.core_type<tc>} {
    %c0 = arith.constant 0 : index
    %c0_0 = arith.constant 0 : index
    %0 = vector.load %arg1[%c0, %c0_0] : memref<1x64xf32, #tpu.memory_space<vmem>>, vector<1x64xf32>
    %1 = vector.shape_cast %0 : vector<1x64xf32> to vector<1x64xf32>
    %2 = vector.broadcast %1 : vector<1x64xf32> to vector<2x64xf32>
    %c0_1 = arith.constant 0 : index
    %c0_2 = arith.constant 0 : index
    %3 = vector.load %arg3[%c0_1, %c0_2] : memref<1x64xf32, #tpu.memory_space<vmem>>, vector<1x64xf32>
    %4 = vector.shape_cast %3 : vector<1x64xf32> to vector<1x64xf32>
    %5 = vector.broadcast %4 : vector<1x64xf32> to vector<2x64xf32>
    %c0_3 = arith.constant 0 : index
    %c0_4 = arith.constant 0 : index
    %6 = vector.load %arg2[%c0_3, %c0_4] : memref<16x64xf32, #tpu.memory_space<vmem>>, vector<16x64xf32>
    %7 = vector.extract_strided_slice %6 {offsets = [0, 0], sizes = [1, 64], strides = [1, 1]} : vector<16x64xf32> to vector<1x64xf32>
    %8 = vector.shape_cast %7 : vector<1x64xf32> to vector<1x64xf32>
    %9 = vector.broadcast %8 : vector<1x64xf32> to vector<2x64xf32>
    %10 = vector.extract_strided_slice %6 {offsets = [1, 0], sizes = [1, 64], strides = [1, 1]} : vector<16x64xf32> to vector<1x64xf32>
    %11 = vector.shape_cast %10 : vector<1x64xf32> to vector<1x64xf32>
    %12 = vector.broadcast %11 : vector<1x64xf32> to vector<2x64xf32>
    %13 = vector.extract_strided_slice %6 {offsets = [2, 0], sizes = [1, 64], strides = [1, 1]} : vector<16x64xf32> to vector<1x64xf32>
    %14 = vector.shape_cast %13 : vector<1x64xf32> to vector<1x64xf32>
    %15 = vector.broadcast %14 : vector<1x64xf32> to vector<2x64xf32>
    %16 = vector.extract_strided_slice %6 {offsets = [3, 0], sizes = [1, 64], strides = [1, 1]} : vector<16x64xf32> to vector<1x64xf32>
    %17 = vector.shape_cast %16 : vector<1x64xf32> to vector<1x64xf32>
    %18 = vector.broadcast %17 : vector<1x64xf32> to vector<2x64xf32>
    %19 = vector.extract_strided_slice %6 {offsets = [4, 0], sizes = [1, 64], strides = [1, 1]} : vector<16x64xf32> to vector<1x64xf32>
    %20 = vector.shape_cast %19 : vector<1x64xf32> to vector<1x64xf32>
    %21 = vector.broadcast %20 : vector<1x64xf32> to vector<2x64xf32>
    %22 = vector.extract_strided_slice %6 {offsets = [5, 0], sizes = [1, 64], strides = [1, 1]} : vector<16x64xf32> to vector<1x64xf32>
    %23 = vector.shape_cast %22 : vector<1x64xf32> to vector<1x64xf32>
    %24 = vector.broadcast %23 : vector<1x64xf32> to vector<2x64xf32>
    %25 = vector.extract_strided_slice %6 {offsets = [6, 0], sizes = [1, 64], strides = [1, 1]} : vector<16x64xf32> to vector<1x64xf32>
    %26 = vector.shape_cast %25 : vector<1x64xf32> to vector<1x64xf32>
    %27 = vector.broadcast %26 : vector<1x64xf32> to vector<2x64xf32>
    %28 = vector.extract_strided_slice %6 {offsets = [7, 0], sizes = [1, 64], strides = [1, 1]} : vector<16x64xf32> to vector<1x64xf32>
    %29 = vector.shape_cast %28 : vector<1x64xf32> to vector<1x64xf32>
    %30 = vector.broadcast %29 : vector<1x64xf32> to vector<2x64xf32>
    %31 = vector.extract_strided_slice %6 {offsets = [8, 0], sizes = [1, 64], strides = [1, 1]} : vector<16x64xf32> to vector<1x64xf32>
    %32 = vector.shape_cast %31 : vector<1x64xf32> to vector<1x64xf32>
    %33 = vector.broadcast %32 : vector<1x64xf32> to vector<2x64xf32>
    %34 = vector.extract_strided_slice %6 {offsets = [9, 0], sizes = [1, 64], strides = [1, 1]} : vector<16x64xf32> to vector<1x64xf32>
    %35 = vector.shape_cast %34 : vector<1x64xf32> to vector<1x64xf32>
    %36 = vector.broadcast %35 : vector<1x64xf32> to vector<2x64xf32>
    %37 = vector.extract_strided_slice %6 {offsets = [10, 0], sizes = [1, 64], strides = [1, 1]} : vector<16x64xf32> to vector<1x64xf32>
    %38 = vector.shape_cast %37 : vector<1x64xf32> to vector<1x64xf32>
    %39 = vector.broadcast %38 : vector<1x64xf32> to vector<2x64xf32>
    %40 = vector.extract_strided_slice %6 {offsets = [11, 0], sizes = [1, 64], strides = [1, 1]} : vector<16x64xf32> to vector<1x64xf32>
    %41 = vector.shape_cast %40 : vector<1x64xf32> to vector<1x64xf32>
    %42 = vector.broadcast %41 : vector<1x64xf32> to vector<2x64xf32>
    %43 = vector.extract_strided_slice %6 {offsets = [12, 0], sizes = [1, 64], strides = [1, 1]} : vector<16x64xf32> to vector<1x64xf32>
    %44 = vector.shape_cast %43 : vector<1x64xf32> to vector<1x64xf32>
    %45 = vector.broadcast %44 : vector<1x64xf32> to vector<2x64xf32>
    %46 = vector.extract_strided_slice %6 {offsets = [13, 0], sizes = [1, 64], strides = [1, 1]} : vector<16x64xf32> to vector<1x64xf32>
    %47 = vector.shape_cast %46 : vector<1x64xf32> to vector<1x64xf32>
    %48 = vector.broadcast %47 : vector<1x64xf32> to vector<2x64xf32>
    %49 = vector.extract_strided_slice %6 {offsets = [14, 0], sizes = [1, 64], strides = [1, 1]} : vector<16x64xf32> to vector<1x64xf32>
    %50 = vector.shape_cast %49 : vector<1x64xf32> to vector<1x64xf32>
    %51 = vector.broadcast %50 : vector<1x64xf32> to vector<2x64xf32>
    %52 = vector.extract_strided_slice %6 {offsets = [15, 0], sizes = [1, 64], strides = [1, 1]} : vector<16x64xf32> to vector<1x64xf32>
    %53 = vector.shape_cast %52 : vector<1x64xf32> to vector<1x64xf32>
    %54 = vector.broadcast %53 : vector<1x64xf32> to vector<2x64xf32>
    %cst = arith.constant 0.000000e+00 : f32
    %55 = vector.broadcast %cst : f32 to vector<2x16xf32>
    %c0_5 = arith.constant 0 : index
    %c0_6 = arith.constant 0 : index
    %c0_7 = arith.constant 0 : index
    %56 = vector.load %arg0[%c0_5, %c0_6, %c0_7] : memref<8x2x1xf32, #tpu.memory_space<vmem>>, vector<1x2x1xf32>
    %57 = vector.shape_cast %56 : vector<1x2x1xf32> to vector<2x1xf32>
    %58 = vector.broadcast %57 : vector<2x1xf32> to vector<2x64xf32>
    %59 = arith.mulf %58, %2 : vector<2x64xf32>
    %60 = arith.addf %59, %5 : vector<2x64xf32>
    %61 = arith.negf %60 : vector<2x64xf32>
    %62 = math.exp %61 : vector<2x64xf32>
    %cst_8 = arith.constant 1.000000e+00 : f32
    %63 = vector.broadcast %cst_8 : f32 to vector<2x64xf32>
    %64 = arith.addf %63, %62 : vector<2x64xf32>
    %65 = arith.divf %63, %64 : vector<2x64xf32>
    %66 = vector.extract_strided_slice %65 {offsets = [0, 0], sizes = [2, 16], strides = [1, 1]} : vector<2x64xf32> to vector<2x16xf32>
    %67 = vector.extract_strided_slice %65 {offsets = [0, 16], sizes = [2, 16], strides = [1, 1]} : vector<2x64xf32> to vector<2x16xf32>
    %68 = vector.extract_strided_slice %65 {offsets = [0, 32], sizes = [2, 16], strides = [1, 1]} : vector<2x64xf32> to vector<2x16xf32>
    %cst_9 = arith.constant 2.000000e+00 : f32
    %69 = vector.broadcast %cst_9 : f32 to vector<2x16xf32>
    %70 = arith.mulf %69, %68 : vector<2x16xf32>
    %cst_10 = arith.constant 1.000000e+00 : f32
    %71 = vector.broadcast %cst_10 : f32 to vector<2x16xf32>
    %72 = arith.subf %70, %71 : vector<2x16xf32>
    %73 = vector.extract_strided_slice %65 {offsets = [0, 48], sizes = [2, 16], strides = [1, 1]} : vector<2x64xf32> to vector<2x16xf32>
    %74 = arith.mulf %67, %55 : vector<2x16xf32>
    %75 = arith.mulf %66, %72 : vector<2x16xf32>
    %76 = arith.addf %74, %75 : vector<2x16xf32>
    %77 = math.tanh %76 : vector<2x16xf32>
    %78 = arith.mulf %73, %77 : vector<2x16xf32>
    %c1 = arith.constant 1 : index
    %c0_11 = arith.constant 0 : index
    %c0_12 = arith.constant 0 : index
    %79 = vector.load %arg0[%c1, %c0_11, %c0_12] : memref<8x2x1xf32, #tpu.memory_space<vmem>>, vector<1x2x1xf32>
    %80 = vector.shape_cast %79 : vector<1x2x1xf32> to vector<2x1xf32>
    %81 = vector.broadcast %80 : vector<2x1xf32> to vector<2x64xf32>
    %82 = arith.mulf %81, %2 : vector<2x64xf32>
    %83 = arith.addf %82, %5 : vector<2x64xf32>
    %84 = vector.extract_strided_slice %78 {offsets = [0, 0], sizes = [2, 1], strides = [1, 1]} : vector<2x16xf32> to vector<2x1xf32>
    %85 = vector.broadcast %84 : vector<2x1xf32> to vector<2x64xf32>
    %86 = arith.mulf %85, %9 : vector<2x64xf32>
    %87 = vector.extract_strided_slice %78 {offsets = [0, 1], sizes = [2, 1], strides = [1, 1]} : vector<2x16xf32> to vector<2x1xf32>
    %88 = vector.broadcast %87 : vector<2x1xf32> to vector<2x64xf32>
    %89 = arith.mulf %88, %12 : vector<2x64xf32>
    %90 = vector.extract_strided_slice %78 {offsets = [0, 2], sizes = [2, 1], strides = [1, 1]} : vector<2x16xf32> to vector<2x1xf32>
    %91 = vector.broadcast %90 : vector<2x1xf32> to vector<2x64xf32>
    %92 = arith.mulf %91, %15 : vector<2x64xf32>
    %93 = vector.extract_strided_slice %78 {offsets = [0, 3], sizes = [2, 1], strides = [1, 1]} : vector<2x16xf32> to vector<2x1xf32>
    %94 = vector.broadcast %93 : vector<2x1xf32> to vector<2x64xf32>
    %95 = arith.mulf %94, %18 : vector<2x64xf32>
    %96 = vector.extract_strided_slice %78 {offsets = [0, 4], sizes = [2, 1], strides = [1, 1]} : vector<2x16xf32> to vector<2x1xf32>
    %97 = vector.broadcast %96 : vector<2x1xf32> to vector<2x64xf32>
    %98 = arith.mulf %97, %21 : vector<2x64xf32>
    %99 = vector.extract_strided_slice %78 {offsets = [0, 5], sizes = [2, 1], strides = [1, 1]} : vector<2x16xf32> to vector<2x1xf32>
    %100 = vector.broadcast %99 : vector<2x1xf32> to vector<2x64xf32>
    %101 = arith.mulf %100, %24 : vector<2x64xf32>
    %102 = vector.extract_strided_slice %78 {offsets = [0, 6], sizes = [2, 1], strides = [1, 1]} : vector<2x16xf32> to vector<2x1xf32>
    %103 = vector.broadcast %102 : vector<2x1xf32> to vector<2x64xf32>
    %104 = arith.mulf %103, %27 : vector<2x64xf32>
    %105 = vector.extract_strided_slice %78 {offsets = [0, 7], sizes = [2, 1], strides = [1, 1]} : vector<2x16xf32> to vector<2x1xf32>
    %106 = vector.broadcast %105 : vector<2x1xf32> to vector<2x64xf32>
    %107 = arith.mulf %106, %30 : vector<2x64xf32>
    %108 = vector.extract_strided_slice %78 {offsets = [0, 8], sizes = [2, 1], strides = [1, 1]} : vector<2x16xf32> to vector<2x1xf32>
    %109 = vector.broadcast %108 : vector<2x1xf32> to vector<2x64xf32>
    %110 = arith.mulf %109, %33 : vector<2x64xf32>
    %111 = vector.extract_strided_slice %78 {offsets = [0, 9], sizes = [2, 1], strides = [1, 1]} : vector<2x16xf32> to vector<2x1xf32>
    %112 = vector.broadcast %111 : vector<2x1xf32> to vector<2x64xf32>
    %113 = arith.mulf %112, %36 : vector<2x64xf32>
    %114 = vector.extract_strided_slice %78 {offsets = [0, 10], sizes = [2, 1], strides = [1, 1]} : vector<2x16xf32> to vector<2x1xf32>
    %115 = vector.broadcast %114 : vector<2x1xf32> to vector<2x64xf32>
    %116 = arith.mulf %115, %39 : vector<2x64xf32>
    %117 = vector.extract_strided_slice %78 {offsets = [0, 11], sizes = [2, 1], strides = [1, 1]} : vector<2x16xf32> to vector<2x1xf32>
    %118 = vector.broadcast %117 : vector<2x1xf32> to vector<2x64xf32>
    %119 = arith.mulf %118, %42 : vector<2x64xf32>
    %120 = vector.extract_strided_slice %78 {offsets = [0, 12], sizes = [2, 1], strides = [1, 1]} : vector<2x16xf32> to vector<2x1xf32>
    %121 = vector.broadcast %120 : vector<2x1xf32> to vector<2x64xf32>
    %122 = arith.mulf %121, %45 : vector<2x64xf32>
    %123 = vector.extract_strided_slice %78 {offsets = [0, 13], sizes = [2, 1], strides = [1, 1]} : vector<2x16xf32> to vector<2x1xf32>
    %124 = vector.broadcast %123 : vector<2x1xf32> to vector<2x64xf32>
    %125 = arith.mulf %124, %48 : vector<2x64xf32>
    %126 = vector.extract_strided_slice %78 {offsets = [0, 14], sizes = [2, 1], strides = [1, 1]} : vector<2x16xf32> to vector<2x1xf32>
    %127 = vector.broadcast %126 : vector<2x1xf32> to vector<2x64xf32>
    %128 = arith.mulf %127, %51 : vector<2x64xf32>
    %129 = vector.extract_strided_slice %78 {offsets = [0, 15], sizes = [2, 1], strides = [1, 1]} : vector<2x16xf32> to vector<2x1xf32>
    %130 = vector.broadcast %129 : vector<2x1xf32> to vector<2x64xf32>
    %131 = arith.mulf %130, %54 : vector<2x64xf32>
    %132 = arith.addf %83, %86 : vector<2x64xf32>
    %133 = arith.addf %89, %92 : vector<2x64xf32>
    %134 = arith.addf %95, %98 : vector<2x64xf32>
    %135 = arith.addf %101, %104 : vector<2x64xf32>
    %136 = arith.addf %107, %110 : vector<2x64xf32>
    %137 = arith.addf %113, %116 : vector<2x64xf32>
    %138 = arith.addf %119, %122 : vector<2x64xf32>
    %139 = arith.addf %125, %128 : vector<2x64xf32>
    %140 = arith.addf %132, %133 : vector<2x64xf32>
    %141 = arith.addf %134, %135 : vector<2x64xf32>
    %142 = arith.addf %136, %137 : vector<2x64xf32>
    %143 = arith.addf %138, %139 : vector<2x64xf32>
    %144 = arith.addf %140, %141 : vector<2x64xf32>
    %145 = arith.addf %142, %143 : vector<2x64xf32>
    %146 = arith.addf %144, %145 : vector<2x64xf32>
    %147 = arith.addf %146, %131 : vector<2x64xf32>
    %148 = arith.negf %147 : vector<2x64xf32>
    %149 = math.exp %148 : vector<2x64xf32>
    %cst_13 = arith.constant 1.000000e+00 : f32
    %150 = vector.broadcast %cst_13 : f32 to vector<2x64xf32>
    %151 = arith.addf %150, %149 : vector<2x64xf32>
    %152 = arith.divf %150, %151 : vector<2x64xf32>
    %153 = vector.extract_strided_slice %152 {offsets = [0, 0], sizes = [2, 16], strides = [1, 1]} : vector<2x64xf32> to vector<2x16xf32>
    %154 = vector.extract_strided_slice %152 {offsets = [0, 16], sizes = [2, 16], strides = [1, 1]} : vector<2x64xf32> to vector<2x16xf32>
    %155 = vector.extract_strided_slice %152 {offsets = [0, 32], sizes = [2, 16], strides = [1, 1]} : vector<2x64xf32> to vector<2x16xf32>
    %cst_14 = arith.constant 2.000000e+00 : f32
    %156 = vector.broadcast %cst_14 : f32 to vector<2x16xf32>
    %157 = arith.mulf %156, %155 : vector<2x16xf32>
    %cst_15 = arith.constant 1.000000e+00 : f32
    %158 = vector.broadcast %cst_15 : f32 to vector<2x16xf32>
    %159 = arith.subf %157, %158 : vector<2x16xf32>
    %160 = vector.extract_strided_slice %152 {offsets = [0, 48], sizes = [2, 16], strides = [1, 1]} : vector<2x64xf32> to vector<2x16xf32>
    %161 = arith.mulf %154, %76 : vector<2x16xf32>
    %162 = arith.mulf %153, %159 : vector<2x16xf32>
    %163 = arith.addf %161, %162 : vector<2x16xf32>
    %164 = math.tanh %163 : vector<2x16xf32>
    %165 = arith.mulf %160, %164 : vector<2x16xf32>
    %c2 = arith.constant 2 : index
    %c0_16 = arith.constant 0 : index
    %c0_17 = arith.constant 0 : index
    %166 = vector.load %arg0[%c2, %c0_16, %c0_17] : memref<8x2x1xf32, #tpu.memory_space<vmem>>, vector<1x2x1xf32>
    %167 = vector.shape_cast %166 : vector<1x2x1xf32> to vector<2x1xf32>
    %168 = vector.broadcast %167 : vector<2x1xf32> to vector<2x64xf32>
    %169 = arith.mulf %168, %2 : vector<2x64xf32>
    %170 = arith.addf %169, %5 : vector<2x64xf32>
    %171 = vector.extract_strided_slice %165 {offsets = [0, 0], sizes = [2, 1], strides = [1, 1]} : vector<2x16xf32> to vector<2x1xf32>
    %172 = vector.broadcast %171 : vector<2x1xf32> to vector<2x64xf32>
    %173 = arith.mulf %172, %9 : vector<2x64xf32>
    %174 = vector.extract_strided_slice %165 {offsets = [0, 1], sizes = [2, 1], strides = [1, 1]} : vector<2x16xf32> to vector<2x1xf32>
    %175 = vector.broadcast %174 : vector<2x1xf32> to vector<2x64xf32>
    %176 = arith.mulf %175, %12 : vector<2x64xf32>
    %177 = vector.extract_strided_slice %165 {offsets = [0, 2], sizes = [2, 1], strides = [1, 1]} : vector<2x16xf32> to vector<2x1xf32>
    %178 = vector.broadcast %177 : vector<2x1xf32> to vector<2x64xf32>
    %179 = arith.mulf %178, %15 : vector<2x64xf32>
    %180 = vector.extract_strided_slice %165 {offsets = [0, 3], sizes = [2, 1], strides = [1, 1]} : vector<2x16xf32> to vector<2x1xf32>
    %181 = vector.broadcast %180 : vector<2x1xf32> to vector<2x64xf32>
    %182 = arith.mulf %181, %18 : vector<2x64xf32>
    %183 = vector.extract_strided_slice %165 {offsets = [0, 4], sizes = [2, 1], strides = [1, 1]} : vector<2x16xf32> to vector<2x1xf32>
    %184 = vector.broadcast %183 : vector<2x1xf32> to vector<2x64xf32>
    %185 = arith.mulf %184, %21 : vector<2x64xf32>
    %186 = vector.extract_strided_slice %165 {offsets = [0, 5], sizes = [2, 1], strides = [1, 1]} : vector<2x16xf32> to vector<2x1xf32>
    %187 = vector.broadcast %186 : vector<2x1xf32> to vector<2x64xf32>
    %188 = arith.mulf %187, %24 : vector<2x64xf32>
    %189 = vector.extract_strided_slice %165 {offsets = [0, 6], sizes = [2, 1], strides = [1, 1]} : vector<2x16xf32> to vector<2x1xf32>
    %190 = vector.broadcast %189 : vector<2x1xf32> to vector<2x64xf32>
    %191 = arith.mulf %190, %27 : vector<2x64xf32>
    %192 = vector.extract_strided_slice %165 {offsets = [0, 7], sizes = [2, 1], strides = [1, 1]} : vector<2x16xf32> to vector<2x1xf32>
    %193 = vector.broadcast %192 : vector<2x1xf32> to vector<2x64xf32>
    %194 = arith.mulf %193, %30 : vector<2x64xf32>
    %195 = vector.extract_strided_slice %165 {offsets = [0, 8], sizes = [2, 1], strides = [1, 1]} : vector<2x16xf32> to vector<2x1xf32>
    %196 = vector.broadcast %195 : vector<2x1xf32> to vector<2x64xf32>
    %197 = arith.mulf %196, %33 : vector<2x64xf32>
    %198 = vector.extract_strided_slice %165 {offsets = [0, 9], sizes = [2, 1], strides = [1, 1]} : vector<2x16xf32> to vector<2x1xf32>
    %199 = vector.broadcast %198 : vector<2x1xf32> to vector<2x64xf32>
    %200 = arith.mulf %199, %36 : vector<2x64xf32>
    %201 = vector.extract_strided_slice %165 {offsets = [0, 10], sizes = [2, 1], strides = [1, 1]} : vector<2x16xf32> to vector<2x1xf32>
    %202 = vector.broadcast %201 : vector<2x1xf32> to vector<2x64xf32>
    %203 = arith.mulf %202, %39 : vector<2x64xf32>
    %204 = vector.extract_strided_slice %165 {offsets = [0, 11], sizes = [2, 1], strides = [1, 1]} : vector<2x16xf32> to vector<2x1xf32>
    %205 = vector.broadcast %204 : vector<2x1xf32> to vector<2x64xf32>
    %206 = arith.mulf %205, %42 : vector<2x64xf32>
    %207 = vector.extract_strided_slice %165 {offsets = [0, 12], sizes = [2, 1], strides = [1, 1]} : vector<2x16xf32> to vector<2x1xf32>
    %208 = vector.broadcast %207 : vector<2x1xf32> to vector<2x64xf32>
    %209 = arith.mulf %208, %45 : vector<2x64xf32>
    %210 = vector.extract_strided_slice %165 {offsets = [0, 13], sizes = [2, 1], strides = [1, 1]} : vector<2x16xf32> to vector<2x1xf32>
    %211 = vector.broadcast %210 : vector<2x1xf32> to vector<2x64xf32>
    %212 = arith.mulf %211, %48 : vector<2x64xf32>
    %213 = vector.extract_strided_slice %165 {offsets = [0, 14], sizes = [2, 1], strides = [1, 1]} : vector<2x16xf32> to vector<2x1xf32>
    %214 = vector.broadcast %213 : vector<2x1xf32> to vector<2x64xf32>
    %215 = arith.mulf %214, %51 : vector<2x64xf32>
    %216 = vector.extract_strided_slice %165 {offsets = [0, 15], sizes = [2, 1], strides = [1, 1]} : vector<2x16xf32> to vector<2x1xf32>
    %217 = vector.broadcast %216 : vector<2x1xf32> to vector<2x64xf32>
    %218 = arith.mulf %217, %54 : vector<2x64xf32>
    %219 = arith.addf %170, %173 : vector<2x64xf32>
    %220 = arith.addf %176, %179 : vector<2x64xf32>
    %221 = arith.addf %182, %185 : vector<2x64xf32>
    %222 = arith.addf %188, %191 : vector<2x64xf32>
    %223 = arith.addf %194, %197 : vector<2x64xf32>
    %224 = arith.addf %200, %203 : vector<2x64xf32>
    %225 = arith.addf %206, %209 : vector<2x64xf32>
    %226 = arith.addf %212, %215 : vector<2x64xf32>
    %227 = arith.addf %219, %220 : vector<2x64xf32>
    %228 = arith.addf %221, %222 : vector<2x64xf32>
    %229 = arith.addf %223, %224 : vector<2x64xf32>
    %230 = arith.addf %225, %226 : vector<2x64xf32>
    %231 = arith.addf %227, %228 : vector<2x64xf32>
    %232 = arith.addf %229, %230 : vector<2x64xf32>
    %233 = arith.addf %231, %232 : vector<2x64xf32>
    %234 = arith.addf %233, %218 : vector<2x64xf32>
    %235 = arith.negf %234 : vector<2x64xf32>
    %236 = math.exp %235 : vector<2x64xf32>
    %cst_18 = arith.constant 1.000000e+00 : f32
    %237 = vector.broadcast %cst_18 : f32 to vector<2x64xf32>
    %238 = arith.addf %237, %236 : vector<2x64xf32>
    %239 = arith.divf %237, %238 : vector<2x64xf32>
    %240 = vector.extract_strided_slice %239 {offsets = [0, 0], sizes = [2, 16], strides = [1, 1]} : vector<2x64xf32> to vector<2x16xf32>
    %241 = vector.extract_strided_slice %239 {offsets = [0, 16], sizes = [2, 16], strides = [1, 1]} : vector<2x64xf32> to vector<2x16xf32>
    %242 = vector.extract_strided_slice %239 {offsets = [0, 32], sizes = [2, 16], strides = [1, 1]} : vector<2x64xf32> to vector<2x16xf32>
    %cst_19 = arith.constant 2.000000e+00 : f32
    %243 = vector.broadcast %cst_19 : f32 to vector<2x16xf32>
    %244 = arith.mulf %243, %242 : vector<2x16xf32>
    %cst_20 = arith.constant 1.000000e+00 : f32
    %245 = vector.broadcast %cst_20 : f32 to vector<2x16xf32>
    %246 = arith.subf %244, %245 : vector<2x16xf32>
    %247 = vector.extract_strided_slice %239 {offsets = [0, 48], sizes = [2, 16], strides = [1, 1]} : vector<2x64xf32> to vector<2x16xf32>
    %248 = arith.mulf %241, %163 : vector<2x16xf32>
    %249 = arith.mulf %240, %246 : vector<2x16xf32>
    %250 = arith.addf %248, %249 : vector<2x16xf32>
    %251 = math.tanh %250 : vector<2x16xf32>
    %252 = arith.mulf %247, %251 : vector<2x16xf32>
    %c3 = arith.constant 3 : index
    %c0_21 = arith.constant 0 : index
    %c0_22 = arith.constant 0 : index
    %253 = vector.load %arg0[%c3, %c0_21, %c0_22] : memref<8x2x1xf32, #tpu.memory_space<vmem>>, vector<1x2x1xf32>
    %254 = vector.shape_cast %253 : vector<1x2x1xf32> to vector<2x1xf32>
    %255 = vector.broadcast %254 : vector<2x1xf32> to vector<2x64xf32>
    %256 = arith.mulf %255, %2 : vector<2x64xf32>
    %257 = arith.addf %256, %5 : vector<2x64xf32>
    %258 = vector.extract_strided_slice %252 {offsets = [0, 0], sizes = [2, 1], strides = [1, 1]} : vector<2x16xf32> to vector<2x1xf32>
    %259 = vector.broadcast %258 : vector<2x1xf32> to vector<2x64xf32>
    %260 = arith.mulf %259, %9 : vector<2x64xf32>
    %261 = vector.extract_strided_slice %252 {offsets = [0, 1], sizes = [2, 1], strides = [1, 1]} : vector<2x16xf32> to vector<2x1xf32>
    %262 = vector.broadcast %261 : vector<2x1xf32> to vector<2x64xf32>
    %263 = arith.mulf %262, %12 : vector<2x64xf32>
    %264 = vector.extract_strided_slice %252 {offsets = [0, 2], sizes = [2, 1], strides = [1, 1]} : vector<2x16xf32> to vector<2x1xf32>
    %265 = vector.broadcast %264 : vector<2x1xf32> to vector<2x64xf32>
    %266 = arith.mulf %265, %15 : vector<2x64xf32>
    %267 = vector.extract_strided_slice %252 {offsets = [0, 3], sizes = [2, 1], strides = [1, 1]} : vector<2x16xf32> to vector<2x1xf32>
    %268 = vector.broadcast %267 : vector<2x1xf32> to vector<2x64xf32>
    %269 = arith.mulf %268, %18 : vector<2x64xf32>
    %270 = vector.extract_strided_slice %252 {offsets = [0, 4], sizes = [2, 1], strides = [1, 1]} : vector<2x16xf32> to vector<2x1xf32>
    %271 = vector.broadcast %270 : vector<2x1xf32> to vector<2x64xf32>
    %272 = arith.mulf %271, %21 : vector<2x64xf32>
    %273 = vector.extract_strided_slice %252 {offsets = [0, 5], sizes = [2, 1], strides = [1, 1]} : vector<2x16xf32> to vector<2x1xf32>
    %274 = vector.broadcast %273 : vector<2x1xf32> to vector<2x64xf32>
    %275 = arith.mulf %274, %24 : vector<2x64xf32>
    %276 = vector.extract_strided_slice %252 {offsets = [0, 6], sizes = [2, 1], strides = [1, 1]} : vector<2x16xf32> to vector<2x1xf32>
    %277 = vector.broadcast %276 : vector<2x1xf32> to vector<2x64xf32>
    %278 = arith.mulf %277, %27 : vector<2x64xf32>
    %279 = vector.extract_strided_slice %252 {offsets = [0, 7], sizes = [2, 1], strides = [1, 1]} : vector<2x16xf32> to vector<2x1xf32>
    %280 = vector.broadcast %279 : vector<2x1xf32> to vector<2x64xf32>
    %281 = arith.mulf %280, %30 : vector<2x64xf32>
    %282 = vector.extract_strided_slice %252 {offsets = [0, 8], sizes = [2, 1], strides = [1, 1]} : vector<2x16xf32> to vector<2x1xf32>
    %283 = vector.broadcast %282 : vector<2x1xf32> to vector<2x64xf32>
    %284 = arith.mulf %283, %33 : vector<2x64xf32>
    %285 = vector.extract_strided_slice %252 {offsets = [0, 9], sizes = [2, 1], strides = [1, 1]} : vector<2x16xf32> to vector<2x1xf32>
    %286 = vector.broadcast %285 : vector<2x1xf32> to vector<2x64xf32>
    %287 = arith.mulf %286, %36 : vector<2x64xf32>
    %288 = vector.extract_strided_slice %252 {offsets = [0, 10], sizes = [2, 1], strides = [1, 1]} : vector<2x16xf32> to vector<2x1xf32>
    %289 = vector.broadcast %288 : vector<2x1xf32> to vector<2x64xf32>
    %290 = arith.mulf %289, %39 : vector<2x64xf32>
    %291 = vector.extract_strided_slice %252 {offsets = [0, 11], sizes = [2, 1], strides = [1, 1]} : vector<2x16xf32> to vector<2x1xf32>
    %292 = vector.broadcast %291 : vector<2x1xf32> to vector<2x64xf32>
    %293 = arith.mulf %292, %42 : vector<2x64xf32>
    %294 = vector.extract_strided_slice %252 {offsets = [0, 12], sizes = [2, 1], strides = [1, 1]} : vector<2x16xf32> to vector<2x1xf32>
    %295 = vector.broadcast %294 : vector<2x1xf32> to vector<2x64xf32>
    %296 = arith.mulf %295, %45 : vector<2x64xf32>
    %297 = vector.extract_strided_slice %252 {offsets = [0, 13], sizes = [2, 1], strides = [1, 1]} : vector<2x16xf32> to vector<2x1xf32>
    %298 = vector.broadcast %297 : vector<2x1xf32> to vector<2x64xf32>
    %299 = arith.mulf %298, %48 : vector<2x64xf32>
    %300 = vector.extract_strided_slice %252 {offsets = [0, 14], sizes = [2, 1], strides = [1, 1]} : vector<2x16xf32> to vector<2x1xf32>
    %301 = vector.broadcast %300 : vector<2x1xf32> to vector<2x64xf32>
    %302 = arith.mulf %301, %51 : vector<2x64xf32>
    %303 = vector.extract_strided_slice %252 {offsets = [0, 15], sizes = [2, 1], strides = [1, 1]} : vector<2x16xf32> to vector<2x1xf32>
    %304 = vector.broadcast %303 : vector<2x1xf32> to vector<2x64xf32>
    %305 = arith.mulf %304, %54 : vector<2x64xf32>
    %306 = arith.addf %257, %260 : vector<2x64xf32>
    %307 = arith.addf %263, %266 : vector<2x64xf32>
    %308 = arith.addf %269, %272 : vector<2x64xf32>
    %309 = arith.addf %275, %278 : vector<2x64xf32>
    %310 = arith.addf %281, %284 : vector<2x64xf32>
    %311 = arith.addf %287, %290 : vector<2x64xf32>
    %312 = arith.addf %293, %296 : vector<2x64xf32>
    %313 = arith.addf %299, %302 : vector<2x64xf32>
    %314 = arith.addf %306, %307 : vector<2x64xf32>
    %315 = arith.addf %308, %309 : vector<2x64xf32>
    %316 = arith.addf %310, %311 : vector<2x64xf32>
    %317 = arith.addf %312, %313 : vector<2x64xf32>
    %318 = arith.addf %314, %315 : vector<2x64xf32>
    %319 = arith.addf %316, %317 : vector<2x64xf32>
    %320 = arith.addf %318, %319 : vector<2x64xf32>
    %321 = arith.addf %320, %305 : vector<2x64xf32>
    %322 = arith.negf %321 : vector<2x64xf32>
    %323 = math.exp %322 : vector<2x64xf32>
    %cst_23 = arith.constant 1.000000e+00 : f32
    %324 = vector.broadcast %cst_23 : f32 to vector<2x64xf32>
    %325 = arith.addf %324, %323 : vector<2x64xf32>
    %326 = arith.divf %324, %325 : vector<2x64xf32>
    %327 = vector.extract_strided_slice %326 {offsets = [0, 0], sizes = [2, 16], strides = [1, 1]} : vector<2x64xf32> to vector<2x16xf32>
    %328 = vector.extract_strided_slice %326 {offsets = [0, 16], sizes = [2, 16], strides = [1, 1]} : vector<2x64xf32> to vector<2x16xf32>
    %329 = vector.extract_strided_slice %326 {offsets = [0, 32], sizes = [2, 16], strides = [1, 1]} : vector<2x64xf32> to vector<2x16xf32>
    %cst_24 = arith.constant 2.000000e+00 : f32
    %330 = vector.broadcast %cst_24 : f32 to vector<2x16xf32>
    %331 = arith.mulf %330, %329 : vector<2x16xf32>
    %cst_25 = arith.constant 1.000000e+00 : f32
    %332 = vector.broadcast %cst_25 : f32 to vector<2x16xf32>
    %333 = arith.subf %331, %332 : vector<2x16xf32>
    %334 = vector.extract_strided_slice %326 {offsets = [0, 48], sizes = [2, 16], strides = [1, 1]} : vector<2x64xf32> to vector<2x16xf32>
    %335 = arith.mulf %328, %250 : vector<2x16xf32>
    %336 = arith.mulf %327, %333 : vector<2x16xf32>
    %337 = arith.addf %335, %336 : vector<2x16xf32>
    %338 = math.tanh %337 : vector<2x16xf32>
    %339 = arith.mulf %334, %338 : vector<2x16xf32>
    %c4 = arith.constant 4 : index
    %c0_26 = arith.constant 0 : index
    %c0_27 = arith.constant 0 : index
    %340 = vector.load %arg0[%c4, %c0_26, %c0_27] : memref<8x2x1xf32, #tpu.memory_space<vmem>>, vector<1x2x1xf32>
    %341 = vector.shape_cast %340 : vector<1x2x1xf32> to vector<2x1xf32>
    %342 = vector.broadcast %341 : vector<2x1xf32> to vector<2x64xf32>
    %343 = arith.mulf %342, %2 : vector<2x64xf32>
    %344 = arith.addf %343, %5 : vector<2x64xf32>
    %345 = vector.extract_strided_slice %339 {offsets = [0, 0], sizes = [2, 1], strides = [1, 1]} : vector<2x16xf32> to vector<2x1xf32>
    %346 = vector.broadcast %345 : vector<2x1xf32> to vector<2x64xf32>
    %347 = arith.mulf %346, %9 : vector<2x64xf32>
    %348 = vector.extract_strided_slice %339 {offsets = [0, 1], sizes = [2, 1], strides = [1, 1]} : vector<2x16xf32> to vector<2x1xf32>
    %349 = vector.broadcast %348 : vector<2x1xf32> to vector<2x64xf32>
    %350 = arith.mulf %349, %12 : vector<2x64xf32>
    %351 = vector.extract_strided_slice %339 {offsets = [0, 2], sizes = [2, 1], strides = [1, 1]} : vector<2x16xf32> to vector<2x1xf32>
    %352 = vector.broadcast %351 : vector<2x1xf32> to vector<2x64xf32>
    %353 = arith.mulf %352, %15 : vector<2x64xf32>
    %354 = vector.extract_strided_slice %339 {offsets = [0, 3], sizes = [2, 1], strides = [1, 1]} : vector<2x16xf32> to vector<2x1xf32>
    %355 = vector.broadcast %354 : vector<2x1xf32> to vector<2x64xf32>
    %356 = arith.mulf %355, %18 : vector<2x64xf32>
    %357 = vector.extract_strided_slice %339 {offsets = [0, 4], sizes = [2, 1], strides = [1, 1]} : vector<2x16xf32> to vector<2x1xf32>
    %358 = vector.broadcast %357 : vector<2x1xf32> to vector<2x64xf32>
    %359 = arith.mulf %358, %21 : vector<2x64xf32>
    %360 = vector.extract_strided_slice %339 {offsets = [0, 5], sizes = [2, 1], strides = [1, 1]} : vector<2x16xf32> to vector<2x1xf32>
    %361 = vector.broadcast %360 : vector<2x1xf32> to vector<2x64xf32>
    %362 = arith.mulf %361, %24 : vector<2x64xf32>
    %363 = vector.extract_strided_slice %339 {offsets = [0, 6], sizes = [2, 1], strides = [1, 1]} : vector<2x16xf32> to vector<2x1xf32>
    %364 = vector.broadcast %363 : vector<2x1xf32> to vector<2x64xf32>
    %365 = arith.mulf %364, %27 : vector<2x64xf32>
    %366 = vector.extract_strided_slice %339 {offsets = [0, 7], sizes = [2, 1], strides = [1, 1]} : vector<2x16xf32> to vector<2x1xf32>
    %367 = vector.broadcast %366 : vector<2x1xf32> to vector<2x64xf32>
    %368 = arith.mulf %367, %30 : vector<2x64xf32>
    %369 = vector.extract_strided_slice %339 {offsets = [0, 8], sizes = [2, 1], strides = [1, 1]} : vector<2x16xf32> to vector<2x1xf32>
    %370 = vector.broadcast %369 : vector<2x1xf32> to vector<2x64xf32>
    %371 = arith.mulf %370, %33 : vector<2x64xf32>
    %372 = vector.extract_strided_slice %339 {offsets = [0, 9], sizes = [2, 1], strides = [1, 1]} : vector<2x16xf32> to vector<2x1xf32>
    %373 = vector.broadcast %372 : vector<2x1xf32> to vector<2x64xf32>
    %374 = arith.mulf %373, %36 : vector<2x64xf32>
    %375 = vector.extract_strided_slice %339 {offsets = [0, 10], sizes = [2, 1], strides = [1, 1]} : vector<2x16xf32> to vector<2x1xf32>
    %376 = vector.broadcast %375 : vector<2x1xf32> to vector<2x64xf32>
    %377 = arith.mulf %376, %39 : vector<2x64xf32>
    %378 = vector.extract_strided_slice %339 {offsets = [0, 11], sizes = [2, 1], strides = [1, 1]} : vector<2x16xf32> to vector<2x1xf32>
    %379 = vector.broadcast %378 : vector<2x1xf32> to vector<2x64xf32>
    %380 = arith.mulf %379, %42 : vector<2x64xf32>
    %381 = vector.extract_strided_slice %339 {offsets = [0, 12], sizes = [2, 1], strides = [1, 1]} : vector<2x16xf32> to vector<2x1xf32>
    %382 = vector.broadcast %381 : vector<2x1xf32> to vector<2x64xf32>
    %383 = arith.mulf %382, %45 : vector<2x64xf32>
    %384 = vector.extract_strided_slice %339 {offsets = [0, 13], sizes = [2, 1], strides = [1, 1]} : vector<2x16xf32> to vector<2x1xf32>
    %385 = vector.broadcast %384 : vector<2x1xf32> to vector<2x64xf32>
    %386 = arith.mulf %385, %48 : vector<2x64xf32>
    %387 = vector.extract_strided_slice %339 {offsets = [0, 14], sizes = [2, 1], strides = [1, 1]} : vector<2x16xf32> to vector<2x1xf32>
    %388 = vector.broadcast %387 : vector<2x1xf32> to vector<2x64xf32>
    %389 = arith.mulf %388, %51 : vector<2x64xf32>
    %390 = vector.extract_strided_slice %339 {offsets = [0, 15], sizes = [2, 1], strides = [1, 1]} : vector<2x16xf32> to vector<2x1xf32>
    %391 = vector.broadcast %390 : vector<2x1xf32> to vector<2x64xf32>
    %392 = arith.mulf %391, %54 : vector<2x64xf32>
    %393 = arith.addf %344, %347 : vector<2x64xf32>
    %394 = arith.addf %350, %353 : vector<2x64xf32>
    %395 = arith.addf %356, %359 : vector<2x64xf32>
    %396 = arith.addf %362, %365 : vector<2x64xf32>
    %397 = arith.addf %368, %371 : vector<2x64xf32>
    %398 = arith.addf %374, %377 : vector<2x64xf32>
    %399 = arith.addf %380, %383 : vector<2x64xf32>
    %400 = arith.addf %386, %389 : vector<2x64xf32>
    %401 = arith.addf %393, %394 : vector<2x64xf32>
    %402 = arith.addf %395, %396 : vector<2x64xf32>
    %403 = arith.addf %397, %398 : vector<2x64xf32>
    %404 = arith.addf %399, %400 : vector<2x64xf32>
    %405 = arith.addf %401, %402 : vector<2x64xf32>
    %406 = arith.addf %403, %404 : vector<2x64xf32>
    %407 = arith.addf %405, %406 : vector<2x64xf32>
    %408 = arith.addf %407, %392 : vector<2x64xf32>
    %409 = arith.negf %408 : vector<2x64xf32>
    %410 = math.exp %409 : vector<2x64xf32>
    %cst_28 = arith.constant 1.000000e+00 : f32
    %411 = vector.broadcast %cst_28 : f32 to vector<2x64xf32>
    %412 = arith.addf %411, %410 : vector<2x64xf32>
    %413 = arith.divf %411, %412 : vector<2x64xf32>
    %414 = vector.extract_strided_slice %413 {offsets = [0, 0], sizes = [2, 16], strides = [1, 1]} : vector<2x64xf32> to vector<2x16xf32>
    %415 = vector.extract_strided_slice %413 {offsets = [0, 16], sizes = [2, 16], strides = [1, 1]} : vector<2x64xf32> to vector<2x16xf32>
    %416 = vector.extract_strided_slice %413 {offsets = [0, 32], sizes = [2, 16], strides = [1, 1]} : vector<2x64xf32> to vector<2x16xf32>
    %cst_29 = arith.constant 2.000000e+00 : f32
    %417 = vector.broadcast %cst_29 : f32 to vector<2x16xf32>
    %418 = arith.mulf %417, %416 : vector<2x16xf32>
    %cst_30 = arith.constant 1.000000e+00 : f32
    %419 = vector.broadcast %cst_30 : f32 to vector<2x16xf32>
    %420 = arith.subf %418, %419 : vector<2x16xf32>
    %421 = vector.extract_strided_slice %413 {offsets = [0, 48], sizes = [2, 16], strides = [1, 1]} : vector<2x64xf32> to vector<2x16xf32>
    %422 = arith.mulf %415, %337 : vector<2x16xf32>
    %423 = arith.mulf %414, %420 : vector<2x16xf32>
    %424 = arith.addf %422, %423 : vector<2x16xf32>
    %425 = math.tanh %424 : vector<2x16xf32>
    %426 = arith.mulf %421, %425 : vector<2x16xf32>
    %c5 = arith.constant 5 : index
    %c0_31 = arith.constant 0 : index
    %c0_32 = arith.constant 0 : index
    %427 = vector.load %arg0[%c5, %c0_31, %c0_32] : memref<8x2x1xf32, #tpu.memory_space<vmem>>, vector<1x2x1xf32>
    %428 = vector.shape_cast %427 : vector<1x2x1xf32> to vector<2x1xf32>
    %429 = vector.broadcast %428 : vector<2x1xf32> to vector<2x64xf32>
    %430 = arith.mulf %429, %2 : vector<2x64xf32>
    %431 = arith.addf %430, %5 : vector<2x64xf32>
    %432 = vector.extract_strided_slice %426 {offsets = [0, 0], sizes = [2, 1], strides = [1, 1]} : vector<2x16xf32> to vector<2x1xf32>
    %433 = vector.broadcast %432 : vector<2x1xf32> to vector<2x64xf32>
    %434 = arith.mulf %433, %9 : vector<2x64xf32>
    %435 = vector.extract_strided_slice %426 {offsets = [0, 1], sizes = [2, 1], strides = [1, 1]} : vector<2x16xf32> to vector<2x1xf32>
    %436 = vector.broadcast %435 : vector<2x1xf32> to vector<2x64xf32>
    %437 = arith.mulf %436, %12 : vector<2x64xf32>
    %438 = vector.extract_strided_slice %426 {offsets = [0, 2], sizes = [2, 1], strides = [1, 1]} : vector<2x16xf32> to vector<2x1xf32>
    %439 = vector.broadcast %438 : vector<2x1xf32> to vector<2x64xf32>
    %440 = arith.mulf %439, %15 : vector<2x64xf32>
    %441 = vector.extract_strided_slice %426 {offsets = [0, 3], sizes = [2, 1], strides = [1, 1]} : vector<2x16xf32> to vector<2x1xf32>
    %442 = vector.broadcast %441 : vector<2x1xf32> to vector<2x64xf32>
    %443 = arith.mulf %442, %18 : vector<2x64xf32>
    %444 = vector.extract_strided_slice %426 {offsets = [0, 4], sizes = [2, 1], strides = [1, 1]} : vector<2x16xf32> to vector<2x1xf32>
    %445 = vector.broadcast %444 : vector<2x1xf32> to vector<2x64xf32>
    %446 = arith.mulf %445, %21 : vector<2x64xf32>
    %447 = vector.extract_strided_slice %426 {offsets = [0, 5], sizes = [2, 1], strides = [1, 1]} : vector<2x16xf32> to vector<2x1xf32>
    %448 = vector.broadcast %447 : vector<2x1xf32> to vector<2x64xf32>
    %449 = arith.mulf %448, %24 : vector<2x64xf32>
    %450 = vector.extract_strided_slice %426 {offsets = [0, 6], sizes = [2, 1], strides = [1, 1]} : vector<2x16xf32> to vector<2x1xf32>
    %451 = vector.broadcast %450 : vector<2x1xf32> to vector<2x64xf32>
    %452 = arith.mulf %451, %27 : vector<2x64xf32>
    %453 = vector.extract_strided_slice %426 {offsets = [0, 7], sizes = [2, 1], strides = [1, 1]} : vector<2x16xf32> to vector<2x1xf32>
    %454 = vector.broadcast %453 : vector<2x1xf32> to vector<2x64xf32>
    %455 = arith.mulf %454, %30 : vector<2x64xf32>
    %456 = vector.extract_strided_slice %426 {offsets = [0, 8], sizes = [2, 1], strides = [1, 1]} : vector<2x16xf32> to vector<2x1xf32>
    %457 = vector.broadcast %456 : vector<2x1xf32> to vector<2x64xf32>
    %458 = arith.mulf %457, %33 : vector<2x64xf32>
    %459 = vector.extract_strided_slice %426 {offsets = [0, 9], sizes = [2, 1], strides = [1, 1]} : vector<2x16xf32> to vector<2x1xf32>
    %460 = vector.broadcast %459 : vector<2x1xf32> to vector<2x64xf32>
    %461 = arith.mulf %460, %36 : vector<2x64xf32>
    %462 = vector.extract_strided_slice %426 {offsets = [0, 10], sizes = [2, 1], strides = [1, 1]} : vector<2x16xf32> to vector<2x1xf32>
    %463 = vector.broadcast %462 : vector<2x1xf32> to vector<2x64xf32>
    %464 = arith.mulf %463, %39 : vector<2x64xf32>
    %465 = vector.extract_strided_slice %426 {offsets = [0, 11], sizes = [2, 1], strides = [1, 1]} : vector<2x16xf32> to vector<2x1xf32>
    %466 = vector.broadcast %465 : vector<2x1xf32> to vector<2x64xf32>
    %467 = arith.mulf %466, %42 : vector<2x64xf32>
    %468 = vector.extract_strided_slice %426 {offsets = [0, 12], sizes = [2, 1], strides = [1, 1]} : vector<2x16xf32> to vector<2x1xf32>
    %469 = vector.broadcast %468 : vector<2x1xf32> to vector<2x64xf32>
    %470 = arith.mulf %469, %45 : vector<2x64xf32>
    %471 = vector.extract_strided_slice %426 {offsets = [0, 13], sizes = [2, 1], strides = [1, 1]} : vector<2x16xf32> to vector<2x1xf32>
    %472 = vector.broadcast %471 : vector<2x1xf32> to vector<2x64xf32>
    %473 = arith.mulf %472, %48 : vector<2x64xf32>
    %474 = vector.extract_strided_slice %426 {offsets = [0, 14], sizes = [2, 1], strides = [1, 1]} : vector<2x16xf32> to vector<2x1xf32>
    %475 = vector.broadcast %474 : vector<2x1xf32> to vector<2x64xf32>
    %476 = arith.mulf %475, %51 : vector<2x64xf32>
    %477 = vector.extract_strided_slice %426 {offsets = [0, 15], sizes = [2, 1], strides = [1, 1]} : vector<2x16xf32> to vector<2x1xf32>
    %478 = vector.broadcast %477 : vector<2x1xf32> to vector<2x64xf32>
    %479 = arith.mulf %478, %54 : vector<2x64xf32>
    %480 = arith.addf %431, %434 : vector<2x64xf32>
    %481 = arith.addf %437, %440 : vector<2x64xf32>
    %482 = arith.addf %443, %446 : vector<2x64xf32>
    %483 = arith.addf %449, %452 : vector<2x64xf32>
    %484 = arith.addf %455, %458 : vector<2x64xf32>
    %485 = arith.addf %461, %464 : vector<2x64xf32>
    %486 = arith.addf %467, %470 : vector<2x64xf32>
    %487 = arith.addf %473, %476 : vector<2x64xf32>
    %488 = arith.addf %480, %481 : vector<2x64xf32>
    %489 = arith.addf %482, %483 : vector<2x64xf32>
    %490 = arith.addf %484, %485 : vector<2x64xf32>
    %491 = arith.addf %486, %487 : vector<2x64xf32>
    %492 = arith.addf %488, %489 : vector<2x64xf32>
    %493 = arith.addf %490, %491 : vector<2x64xf32>
    %494 = arith.addf %492, %493 : vector<2x64xf32>
    %495 = arith.addf %494, %479 : vector<2x64xf32>
    %496 = arith.negf %495 : vector<2x64xf32>
    %497 = math.exp %496 : vector<2x64xf32>
    %cst_33 = arith.constant 1.000000e+00 : f32
    %498 = vector.broadcast %cst_33 : f32 to vector<2x64xf32>
    %499 = arith.addf %498, %497 : vector<2x64xf32>
    %500 = arith.divf %498, %499 : vector<2x64xf32>
    %501 = vector.extract_strided_slice %500 {offsets = [0, 0], sizes = [2, 16], strides = [1, 1]} : vector<2x64xf32> to vector<2x16xf32>
    %502 = vector.extract_strided_slice %500 {offsets = [0, 16], sizes = [2, 16], strides = [1, 1]} : vector<2x64xf32> to vector<2x16xf32>
    %503 = vector.extract_strided_slice %500 {offsets = [0, 32], sizes = [2, 16], strides = [1, 1]} : vector<2x64xf32> to vector<2x16xf32>
    %cst_34 = arith.constant 2.000000e+00 : f32
    %504 = vector.broadcast %cst_34 : f32 to vector<2x16xf32>
    %505 = arith.mulf %504, %503 : vector<2x16xf32>
    %cst_35 = arith.constant 1.000000e+00 : f32
    %506 = vector.broadcast %cst_35 : f32 to vector<2x16xf32>
    %507 = arith.subf %505, %506 : vector<2x16xf32>
    %508 = vector.extract_strided_slice %500 {offsets = [0, 48], sizes = [2, 16], strides = [1, 1]} : vector<2x64xf32> to vector<2x16xf32>
    %509 = arith.mulf %502, %424 : vector<2x16xf32>
    %510 = arith.mulf %501, %507 : vector<2x16xf32>
    %511 = arith.addf %509, %510 : vector<2x16xf32>
    %512 = math.tanh %511 : vector<2x16xf32>
    %513 = arith.mulf %508, %512 : vector<2x16xf32>
    %c6 = arith.constant 6 : index
    %c0_36 = arith.constant 0 : index
    %c0_37 = arith.constant 0 : index
    %514 = vector.load %arg0[%c6, %c0_36, %c0_37] : memref<8x2x1xf32, #tpu.memory_space<vmem>>, vector<1x2x1xf32>
    %515 = vector.shape_cast %514 : vector<1x2x1xf32> to vector<2x1xf32>
    %516 = vector.broadcast %515 : vector<2x1xf32> to vector<2x64xf32>
    %517 = arith.mulf %516, %2 : vector<2x64xf32>
    %518 = arith.addf %517, %5 : vector<2x64xf32>
    %519 = vector.extract_strided_slice %513 {offsets = [0, 0], sizes = [2, 1], strides = [1, 1]} : vector<2x16xf32> to vector<2x1xf32>
    %520 = vector.broadcast %519 : vector<2x1xf32> to vector<2x64xf32>
    %521 = arith.mulf %520, %9 : vector<2x64xf32>
    %522 = vector.extract_strided_slice %513 {offsets = [0, 1], sizes = [2, 1], strides = [1, 1]} : vector<2x16xf32> to vector<2x1xf32>
    %523 = vector.broadcast %522 : vector<2x1xf32> to vector<2x64xf32>
    %524 = arith.mulf %523, %12 : vector<2x64xf32>
    %525 = vector.extract_strided_slice %513 {offsets = [0, 2], sizes = [2, 1], strides = [1, 1]} : vector<2x16xf32> to vector<2x1xf32>
    %526 = vector.broadcast %525 : vector<2x1xf32> to vector<2x64xf32>
    %527 = arith.mulf %526, %15 : vector<2x64xf32>
    %528 = vector.extract_strided_slice %513 {offsets = [0, 3], sizes = [2, 1], strides = [1, 1]} : vector<2x16xf32> to vector<2x1xf32>
    %529 = vector.broadcast %528 : vector<2x1xf32> to vector<2x64xf32>
    %530 = arith.mulf %529, %18 : vector<2x64xf32>
    %531 = vector.extract_strided_slice %513 {offsets = [0, 4], sizes = [2, 1], strides = [1, 1]} : vector<2x16xf32> to vector<2x1xf32>
    %532 = vector.broadcast %531 : vector<2x1xf32> to vector<2x64xf32>
    %533 = arith.mulf %532, %21 : vector<2x64xf32>
    %534 = vector.extract_strided_slice %513 {offsets = [0, 5], sizes = [2, 1], strides = [1, 1]} : vector<2x16xf32> to vector<2x1xf32>
    %535 = vector.broadcast %534 : vector<2x1xf32> to vector<2x64xf32>
    %536 = arith.mulf %535, %24 : vector<2x64xf32>
    %537 = vector.extract_strided_slice %513 {offsets = [0, 6], sizes = [2, 1], strides = [1, 1]} : vector<2x16xf32> to vector<2x1xf32>
    %538 = vector.broadcast %537 : vector<2x1xf32> to vector<2x64xf32>
    %539 = arith.mulf %538, %27 : vector<2x64xf32>
    %540 = vector.extract_strided_slice %513 {offsets = [0, 7], sizes = [2, 1], strides = [1, 1]} : vector<2x16xf32> to vector<2x1xf32>
    %541 = vector.broadcast %540 : vector<2x1xf32> to vector<2x64xf32>
    %542 = arith.mulf %541, %30 : vector<2x64xf32>
    %543 = vector.extract_strided_slice %513 {offsets = [0, 8], sizes = [2, 1], strides = [1, 1]} : vector<2x16xf32> to vector<2x1xf32>
    %544 = vector.broadcast %543 : vector<2x1xf32> to vector<2x64xf32>
    %545 = arith.mulf %544, %33 : vector<2x64xf32>
    %546 = vector.extract_strided_slice %513 {offsets = [0, 9], sizes = [2, 1], strides = [1, 1]} : vector<2x16xf32> to vector<2x1xf32>
    %547 = vector.broadcast %546 : vector<2x1xf32> to vector<2x64xf32>
    %548 = arith.mulf %547, %36 : vector<2x64xf32>
    %549 = vector.extract_strided_slice %513 {offsets = [0, 10], sizes = [2, 1], strides = [1, 1]} : vector<2x16xf32> to vector<2x1xf32>
    %550 = vector.broadcast %549 : vector<2x1xf32> to vector<2x64xf32>
    %551 = arith.mulf %550, %39 : vector<2x64xf32>
    %552 = vector.extract_strided_slice %513 {offsets = [0, 11], sizes = [2, 1], strides = [1, 1]} : vector<2x16xf32> to vector<2x1xf32>
    %553 = vector.broadcast %552 : vector<2x1xf32> to vector<2x64xf32>
    %554 = arith.mulf %553, %42 : vector<2x64xf32>
    %555 = vector.extract_strided_slice %513 {offsets = [0, 12], sizes = [2, 1], strides = [1, 1]} : vector<2x16xf32> to vector<2x1xf32>
    %556 = vector.broadcast %555 : vector<2x1xf32> to vector<2x64xf32>
    %557 = arith.mulf %556, %45 : vector<2x64xf32>
    %558 = vector.extract_strided_slice %513 {offsets = [0, 13], sizes = [2, 1], strides = [1, 1]} : vector<2x16xf32> to vector<2x1xf32>
    %559 = vector.broadcast %558 : vector<2x1xf32> to vector<2x64xf32>
    %560 = arith.mulf %559, %48 : vector<2x64xf32>
    %561 = vector.extract_strided_slice %513 {offsets = [0, 14], sizes = [2, 1], strides = [1, 1]} : vector<2x16xf32> to vector<2x1xf32>
    %562 = vector.broadcast %561 : vector<2x1xf32> to vector<2x64xf32>
    %563 = arith.mulf %562, %51 : vector<2x64xf32>
    %564 = vector.extract_strided_slice %513 {offsets = [0, 15], sizes = [2, 1], strides = [1, 1]} : vector<2x16xf32> to vector<2x1xf32>
    %565 = vector.broadcast %564 : vector<2x1xf32> to vector<2x64xf32>
    %566 = arith.mulf %565, %54 : vector<2x64xf32>
    %567 = arith.addf %518, %521 : vector<2x64xf32>
    %568 = arith.addf %524, %527 : vector<2x64xf32>
    %569 = arith.addf %530, %533 : vector<2x64xf32>
    %570 = arith.addf %536, %539 : vector<2x64xf32>
    %571 = arith.addf %542, %545 : vector<2x64xf32>
    %572 = arith.addf %548, %551 : vector<2x64xf32>
    %573 = arith.addf %554, %557 : vector<2x64xf32>
    %574 = arith.addf %560, %563 : vector<2x64xf32>
    %575 = arith.addf %567, %568 : vector<2x64xf32>
    %576 = arith.addf %569, %570 : vector<2x64xf32>
    %577 = arith.addf %571, %572 : vector<2x64xf32>
    %578 = arith.addf %573, %574 : vector<2x64xf32>
    %579 = arith.addf %575, %576 : vector<2x64xf32>
    %580 = arith.addf %577, %578 : vector<2x64xf32>
    %581 = arith.addf %579, %580 : vector<2x64xf32>
    %582 = arith.addf %581, %566 : vector<2x64xf32>
    %583 = arith.negf %582 : vector<2x64xf32>
    %584 = math.exp %583 : vector<2x64xf32>
    %cst_38 = arith.constant 1.000000e+00 : f32
    %585 = vector.broadcast %cst_38 : f32 to vector<2x64xf32>
    %586 = arith.addf %585, %584 : vector<2x64xf32>
    %587 = arith.divf %585, %586 : vector<2x64xf32>
    %588 = vector.extract_strided_slice %587 {offsets = [0, 0], sizes = [2, 16], strides = [1, 1]} : vector<2x64xf32> to vector<2x16xf32>
    %589 = vector.extract_strided_slice %587 {offsets = [0, 16], sizes = [2, 16], strides = [1, 1]} : vector<2x64xf32> to vector<2x16xf32>
    %590 = vector.extract_strided_slice %587 {offsets = [0, 32], sizes = [2, 16], strides = [1, 1]} : vector<2x64xf32> to vector<2x16xf32>
    %cst_39 = arith.constant 2.000000e+00 : f32
    %591 = vector.broadcast %cst_39 : f32 to vector<2x16xf32>
    %592 = arith.mulf %591, %590 : vector<2x16xf32>
    %cst_40 = arith.constant 1.000000e+00 : f32
    %593 = vector.broadcast %cst_40 : f32 to vector<2x16xf32>
    %594 = arith.subf %592, %593 : vector<2x16xf32>
    %595 = vector.extract_strided_slice %587 {offsets = [0, 48], sizes = [2, 16], strides = [1, 1]} : vector<2x64xf32> to vector<2x16xf32>
    %596 = arith.mulf %589, %511 : vector<2x16xf32>
    %597 = arith.mulf %588, %594 : vector<2x16xf32>
    %598 = arith.addf %596, %597 : vector<2x16xf32>
    %599 = math.tanh %598 : vector<2x16xf32>
    %600 = arith.mulf %595, %599 : vector<2x16xf32>
    %c7 = arith.constant 7 : index
    %c0_41 = arith.constant 0 : index
    %c0_42 = arith.constant 0 : index
    %601 = vector.load %arg0[%c7, %c0_41, %c0_42] : memref<8x2x1xf32, #tpu.memory_space<vmem>>, vector<1x2x1xf32>
    %602 = vector.shape_cast %601 : vector<1x2x1xf32> to vector<2x1xf32>
    %603 = vector.broadcast %602 : vector<2x1xf32> to vector<2x64xf32>
    %604 = arith.mulf %603, %2 : vector<2x64xf32>
    %605 = arith.addf %604, %5 : vector<2x64xf32>
    %606 = vector.extract_strided_slice %600 {offsets = [0, 0], sizes = [2, 1], strides = [1, 1]} : vector<2x16xf32> to vector<2x1xf32>
    %607 = vector.broadcast %606 : vector<2x1xf32> to vector<2x64xf32>
    %608 = arith.mulf %607, %9 : vector<2x64xf32>
    %609 = vector.extract_strided_slice %600 {offsets = [0, 1], sizes = [2, 1], strides = [1, 1]} : vector<2x16xf32> to vector<2x1xf32>
    %610 = vector.broadcast %609 : vector<2x1xf32> to vector<2x64xf32>
    %611 = arith.mulf %610, %12 : vector<2x64xf32>
    %612 = vector.extract_strided_slice %600 {offsets = [0, 2], sizes = [2, 1], strides = [1, 1]} : vector<2x16xf32> to vector<2x1xf32>
    %613 = vector.broadcast %612 : vector<2x1xf32> to vector<2x64xf32>
    %614 = arith.mulf %613, %15 : vector<2x64xf32>
    %615 = vector.extract_strided_slice %600 {offsets = [0, 3], sizes = [2, 1], strides = [1, 1]} : vector<2x16xf32> to vector<2x1xf32>
    %616 = vector.broadcast %615 : vector<2x1xf32> to vector<2x64xf32>
    %617 = arith.mulf %616, %18 : vector<2x64xf32>
    %618 = vector.extract_strided_slice %600 {offsets = [0, 4], sizes = [2, 1], strides = [1, 1]} : vector<2x16xf32> to vector<2x1xf32>
    %619 = vector.broadcast %618 : vector<2x1xf32> to vector<2x64xf32>
    %620 = arith.mulf %619, %21 : vector<2x64xf32>
    %621 = vector.extract_strided_slice %600 {offsets = [0, 5], sizes = [2, 1], strides = [1, 1]} : vector<2x16xf32> to vector<2x1xf32>
    %622 = vector.broadcast %621 : vector<2x1xf32> to vector<2x64xf32>
    %623 = arith.mulf %622, %24 : vector<2x64xf32>
    %624 = vector.extract_strided_slice %600 {offsets = [0, 6], sizes = [2, 1], strides = [1, 1]} : vector<2x16xf32> to vector<2x1xf32>
    %625 = vector.broadcast %624 : vector<2x1xf32> to vector<2x64xf32>
    %626 = arith.mulf %625, %27 : vector<2x64xf32>
    %627 = vector.extract_strided_slice %600 {offsets = [0, 7], sizes = [2, 1], strides = [1, 1]} : vector<2x16xf32> to vector<2x1xf32>
    %628 = vector.broadcast %627 : vector<2x1xf32> to vector<2x64xf32>
    %629 = arith.mulf %628, %30 : vector<2x64xf32>
    %630 = vector.extract_strided_slice %600 {offsets = [0, 8], sizes = [2, 1], strides = [1, 1]} : vector<2x16xf32> to vector<2x1xf32>
    %631 = vector.broadcast %630 : vector<2x1xf32> to vector<2x64xf32>
    %632 = arith.mulf %631, %33 : vector<2x64xf32>
    %633 = vector.extract_strided_slice %600 {offsets = [0, 9], sizes = [2, 1], strides = [1, 1]} : vector<2x16xf32> to vector<2x1xf32>
    %634 = vector.broadcast %633 : vector<2x1xf32> to vector<2x64xf32>
    %635 = arith.mulf %634, %36 : vector<2x64xf32>
    %636 = vector.extract_strided_slice %600 {offsets = [0, 10], sizes = [2, 1], strides = [1, 1]} : vector<2x16xf32> to vector<2x1xf32>
    %637 = vector.broadcast %636 : vector<2x1xf32> to vector<2x64xf32>
    %638 = arith.mulf %637, %39 : vector<2x64xf32>
    %639 = vector.extract_strided_slice %600 {offsets = [0, 11], sizes = [2, 1], strides = [1, 1]} : vector<2x16xf32> to vector<2x1xf32>
    %640 = vector.broadcast %639 : vector<2x1xf32> to vector<2x64xf32>
    %641 = arith.mulf %640, %42 : vector<2x64xf32>
    %642 = vector.extract_strided_slice %600 {offsets = [0, 12], sizes = [2, 1], strides = [1, 1]} : vector<2x16xf32> to vector<2x1xf32>
    %643 = vector.broadcast %642 : vector<2x1xf32> to vector<2x64xf32>
    %644 = arith.mulf %643, %45 : vector<2x64xf32>
    %645 = vector.extract_strided_slice %600 {offsets = [0, 13], sizes = [2, 1], strides = [1, 1]} : vector<2x16xf32> to vector<2x1xf32>
    %646 = vector.broadcast %645 : vector<2x1xf32> to vector<2x64xf32>
    %647 = arith.mulf %646, %48 : vector<2x64xf32>
    %648 = vector.extract_strided_slice %600 {offsets = [0, 14], sizes = [2, 1], strides = [1, 1]} : vector<2x16xf32> to vector<2x1xf32>
    %649 = vector.broadcast %648 : vector<2x1xf32> to vector<2x64xf32>
    %650 = arith.mulf %649, %51 : vector<2x64xf32>
    %651 = vector.extract_strided_slice %600 {offsets = [0, 15], sizes = [2, 1], strides = [1, 1]} : vector<2x16xf32> to vector<2x1xf32>
    %652 = vector.broadcast %651 : vector<2x1xf32> to vector<2x64xf32>
    %653 = arith.mulf %652, %54 : vector<2x64xf32>
    %654 = arith.addf %605, %608 : vector<2x64xf32>
    %655 = arith.addf %611, %614 : vector<2x64xf32>
    %656 = arith.addf %617, %620 : vector<2x64xf32>
    %657 = arith.addf %623, %626 : vector<2x64xf32>
    %658 = arith.addf %629, %632 : vector<2x64xf32>
    %659 = arith.addf %635, %638 : vector<2x64xf32>
    %660 = arith.addf %641, %644 : vector<2x64xf32>
    %661 = arith.addf %647, %650 : vector<2x64xf32>
    %662 = arith.addf %654, %655 : vector<2x64xf32>
    %663 = arith.addf %656, %657 : vector<2x64xf32>
    %664 = arith.addf %658, %659 : vector<2x64xf32>
    %665 = arith.addf %660, %661 : vector<2x64xf32>
    %666 = arith.addf %662, %663 : vector<2x64xf32>
    %667 = arith.addf %664, %665 : vector<2x64xf32>
    %668 = arith.addf %666, %667 : vector<2x64xf32>
    %669 = arith.addf %668, %653 : vector<2x64xf32>
    %670 = arith.negf %669 : vector<2x64xf32>
    %671 = math.exp %670 : vector<2x64xf32>
    %cst_43 = arith.constant 1.000000e+00 : f32
    %672 = vector.broadcast %cst_43 : f32 to vector<2x64xf32>
    %673 = arith.addf %672, %671 : vector<2x64xf32>
    %674 = arith.divf %672, %673 : vector<2x64xf32>
    %675 = vector.extract_strided_slice %674 {offsets = [0, 0], sizes = [2, 16], strides = [1, 1]} : vector<2x64xf32> to vector<2x16xf32>
    %676 = vector.extract_strided_slice %674 {offsets = [0, 16], sizes = [2, 16], strides = [1, 1]} : vector<2x64xf32> to vector<2x16xf32>
    %677 = vector.extract_strided_slice %674 {offsets = [0, 32], sizes = [2, 16], strides = [1, 1]} : vector<2x64xf32> to vector<2x16xf32>
    %cst_44 = arith.constant 2.000000e+00 : f32
    %678 = vector.broadcast %cst_44 : f32 to vector<2x16xf32>
    %679 = arith.mulf %678, %677 : vector<2x16xf32>
    %cst_45 = arith.constant 1.000000e+00 : f32
    %680 = vector.broadcast %cst_45 : f32 to vector<2x16xf32>
    %681 = arith.subf %679, %680 : vector<2x16xf32>
    %682 = vector.extract_strided_slice %674 {offsets = [0, 48], sizes = [2, 16], strides = [1, 1]} : vector<2x64xf32> to vector<2x16xf32>
    %683 = arith.mulf %676, %598 : vector<2x16xf32>
    %684 = arith.mulf %675, %681 : vector<2x16xf32>
    %685 = arith.addf %683, %684 : vector<2x16xf32>
    %686 = math.tanh %685 : vector<2x16xf32>
    %687 = arith.mulf %682, %686 : vector<2x16xf32>
    %c0_46 = arith.constant 0 : index
    %c0_47 = arith.constant 0 : index
    %688 = vector.load %arg4[%c0_46, %c0_47] : memref<1x16xf32, #tpu.memory_space<vmem>>, vector<1x16xf32>
    %689 = vector.broadcast %688 : vector<1x16xf32> to vector<2x16xf32>
    %690 = arith.mulf %687, %689 : vector<2x16xf32>
    %cst_48 = arith.constant dense<0.000000e+00> : vector<2xf32>
    %691 = vector.multi_reduction <add>, %690, %cst_48 [1] : vector<2x16xf32> to vector<2xf32>
    %692 = vector.shape_cast %691 : vector<2xf32> to vector<2x1xf32>
    %c0_49 = arith.constant 0 : index
    %c0_50 = arith.constant 0 : index
    %693 = memref.load %arg5[%c0_49, %c0_50] : memref<1x1xf32, #tpu.memory_space<smem>>
    %694 = vector.broadcast %693 : f32 to vector<2x1xf32>
    %695 = arith.addf %692, %694 : vector<2x1xf32>
    %c0_51 = arith.constant 0 : index
    %c0_52 = arith.constant 0 : index
    %696 = vector.load %arg6[%c0_51, %c0_52] : memref<2x1xf32, #tpu.memory_space<vmem>>, vector<2x1xf32>
    tpu.vector_store %arg6[%c0_51, %c0_52], %695 {strides = array<i32>} : memref<2x1xf32, #tpu.memory_space<vmem>>, vector<2x1xf32>,
    return
  }
}

</mosaic_0001>

<bundles_post_ra>
// kernel: lstm_forecast.1
= control target key start
LH: loop header
LB: loop body
LE: loop exit
PB: predicated region body
PF: predicated region fallthrough
CT: control target
= control target key end

     0   :  { %v1762_v0 = vmov 0   ;;  %s1299_s27 = smov 96   ;;  %s1300_s30 = smov 16   ;;  %v1770_v19 = vmov 48   ;;  %v1302_v20 = vmov 49   ;;  %v1304_v24 = vmov 52   ;;  %s1755_s0 = inlined_call_operand.vmem [shape: f32[8,2,1], index: 0, kind: input, shape index: {}]   ;;  %s1756_s1 = inlined_call_operand.vmem [shape: f32[1,64], index: 1, kind: input, shape index: {}]   ;;  %s1757_s3 = inlined_call_operand.vmem [shape: f32[1,64], index: 3, kind: input, shape index: {}]   ;;  %s1758_s2 = inlined_call_operand.vmem [shape: f32[16,64], index: 2, kind: input, shape index: {}]   ;;  %s1759_s4 = inlined_call_operand.vmem [shape: f32[1,16], index: 4, kind: input, shape index: {}]   ;;  %s1760_s5 = inlined_call_operand.<no memory space> [shape: f32[1,1], index: 5, kind: input, shape index: {}]   ;;  %s1761_s6 = inlined_call_operand.vmem [shape: f32[2,1], index: 6, kind: output, shape index: {}]  }
   0x1   :  { %1129 = vset.pattern.permute.xlu0 %v1762_v0  ;;  %v104_v1 = vld [vmem:[%s1755_s0] sm:$0x3]  ;;  %v1085_v13 = vld [vmem:[%s1755_s0 + $0x2] sm:$0x3]  ;;  %1130 = vset.pattern.permute.xlu1 %v1770_v19  ;;  %s1303_s7 = smov 32   ;;  %v1305_v25 = vmov 50   ;;  %v40_v47 = vlaneseq }
   0x2   :  { %107 = vperm.xlu0 %1129, %v104_v1   ;;  %v1362_v2 = vld [vmem:[%s1756_s1] ss:$0 sm:$0xff]  ;;  %v1780_v26 = vmov 55   ;;  %v1307_v27 = vmov 51   ;;  %v1772_v28 = vmov 58   ;;  %v1309_v29 = vmov 53  }
   0x3   :  { %v1367_v3 = vld [vmem:[%s1757_s3] ss:$0 sm:$0xff]  ;;  %v1766_v30 = vmov 61   ;;  %v1311_v31 = vmov 54   ;;  %v1776_v32 = vmov 56   ;;  %v1313_v33 = vmov 57  }
   0x4   :  { %v1768_v34 = vmov 59   ;;  %v1778_v35 = vmov 60   ;;  %v1764_v36 = vmov 62   ;;  %v1774_v37 = vmov 63   ;;  %v38_v55 = vld [vmem:[%s1758_s2] sm:$0xff]  ;;  %v39_v1 = vld [vmem:[%s1758_s2 + $0x8] sm:$0xff] }
   0x5   :  { %v1398_v48 = vshrl.u32 %v40_v47, 7  ;;  %s1318_s26 = smov 48   ;;  %vm1068_vm0 = vcmask 123904   ;;  %vm1075_vm1 = vcmask 1024  }
   0x7   :  { %v66_v51 = vsub.s32 6, %v1398_v48  ;;  %v50_v52 = vsub.s32 2, %v1398_v48  ;;  %v54_v53 = vsub.s32 3, %v1398_v48  ;;  %v62_v54 = vsub.s32 5, %v1398_v48 }
   0x8   :  { %v42_v56 = vsub.s32 0, %v1398_v48  ;;  %v46_v57 = vsub.s32 1, %v1398_v48  ;;  %v58_v58 = vsub.s32 4, %v1398_v48  ;;  %v70_v63 = vsub.s32 7, %v1398_v48 }
   0x9   :  { %v1410_v60 = vrot.slane %v38_v55, %v66_v51  ;;  %v1412_v61 = vrot.slane %v38_v55, %v50_v52  ;;  %v1414_v62 = vrot.slane %v38_v55, %v54_v53  ;;  %v1446_v47 = vrot.slane %v39_v1, %v54_v53 }
  0x81   :  { %v108_v4 = vpop.permute.xlu0 %107 }
  0x82   :  { %v110_v5 = vmul.f32 %v1362_v2, %v108_v4 }
  0x84   :  { %v111_v6 = vadd.f32 %v1367_v3, %v110_v5  ;;  %v1420_v5 = vrot.slane %v38_v55, %v62_v54 }
  0x86   :  { %v1083_v7 = vmul.f32 -1.442695, %v111_v6  ;;  %v1422_v6 = vrot.slane %v39_v1, %v46_v57 }
  0x88   :  { %1248 = vpow2.f32 %v1083_v7 }
  0x92   :  { %v1249_v8 = vpop.eup %1248 }
  0x93   :  { %v115_v9 = vadd.f32 1.0, %v1249_v8  ;;  %v1425_v8 = vrot.slane %v38_v55, %v42_v56 }
  0x95   :  { %1250 = vrcp.f32 %v115_v9  ;;  %v1427_v9 = vrot.slane %v38_v55, %v46_v57 }
  0x9f   :  { %v1251_v10 = vpop.eup %1250 }
  0xa0   :  { %v118_v11 = vmul.f32 2.0, %v1251_v10  ;;  %v120_v16 = vmul.f32 0.0, %v1251_v10 }
  0xa2   :  { %v1084_v12 = vadd.f32 -1.0, %v118_v11  ;;  %v1431_v11 = vrot.slane %v39_v1, %v50_v52 }
  0xa4   :  { %122 = vrot.lane.b32.xlu0 %v1084_v12, %s1299_s27 }
  0xa8   :  { %141 = vperm.xlu0 %1129, %v1085_v13   ;;  %v1434_v13 = vrot.slane %v39_v1, %v42_v56 }
  0xac   :  { %1131 = vset.pattern.permute.xlu0 %v1302_v20 }
 0x116   :  { %v123_v14 = vpop.permute.xlu0 %122 }
 0x117   :  { %v125_v15 = vmul.f32 %v1251_v10, %v123_v14  ;;  %v1436_v14 = vrot.slane %v39_v1, %v58_v58 }
 0x119   :  { %127 = vrot.lane.b32.xlu1 %v125_v15, %s1300_s30 }
 0x127   :  { %v142_v41 = vpop.permute.xlu0 %141 }
 0x128   :  { %v144_v7 = vmul.f32 %v1362_v2, %v142_v41 }
 0x18b   :  { %v128_v17 = vpop.permute.xlu1 %127 }
 0x18c   :  { %v1376_v18 = vadd.f32 %v128_v17, %v120_v16 }
 0x18e   :  { %1252 = vtanh.f32 %v1376_v18 }
 0x198   :  { %v1253_v21 = vpop.eup %1252 }
 0x199   :  { %133 = vrot.lane.b32.xlu1 %v1253_v21, %s1303_s7  ;;  %v1440_v21 = vrot.slane %v38_v55, %v70_v63 }
 0x20b   :  { %v134_v22 = vpop.permute.xlu1 %133 }
 0x20c   :  { %v136_v23 = vmul.f32 %v1251_v10, %v134_v22  ;;  %v1429_v10 = vrot.slane %v38_v55, %v58_v58  ;;  %v1442_v22 = vrot.slane %v39_v1, %v62_v54 }
 0x20e   :  { %153 = vperm.xlu0 %1131, %v136_v23   ;;  %148 = vperm.xlu1 %1130, %v136_v23  }
 0x212   :  { %1134 = vset.pattern.permute.xlu0 %v1304_v24  ;;  %1132 = vset.pattern.permute.xlu1 %v1305_v25 }
 0x213   :  { %168 = vperm.xlu0 %1134, %v136_v23   ;;  %158 = vperm.xlu1 %1132, %v136_v23  }
 0x217   :  { %1137 = vset.pattern.permute.xlu0 %v1780_v26  ;;  %1133 = vset.pattern.permute.xlu1 %v1307_v27 }
 0x218   :  { %183 = vperm.xlu0 %1137, %v136_v23   ;;  %163 = vperm.xlu1 %1133, %v136_v23  }
 0x21c   :  { %1140 = vset.pattern.permute.xlu0 %v1772_v28  ;;  %1135 = vset.pattern.permute.xlu1 %v1309_v29 }
 0x21d   :  { %198 = vperm.xlu0 %1140, %v136_v23   ;;  %173 = vperm.xlu1 %1135, %v136_v23  }
 0x221   :  { %1143 = vset.pattern.permute.xlu0 %v1766_v30  ;;  %1136 = vset.pattern.permute.xlu1 %v1311_v31 }
 0x222   :  { %213 = vperm.xlu0 %1143, %v136_v23   ;;  %178 = vperm.xlu1 %1136, %v136_v23  }
 0x226   :  { %1138 = vset.pattern.permute.xlu1 %v1776_v32  ;;  %1147 = vset.pattern.permute.xlu0 %v1770_v19 }
 0x227   :  { %188 = vperm.xlu1 %1138, %v136_v23  }
 0x22b   :  { %1139 = vset.pattern.permute.xlu1 %v1313_v33 }
 0x22c   :  { %193 = vperm.xlu1 %1139, %v136_v23  }
 0x230   :  { %1141 = vset.pattern.permute.xlu1 %v1768_v34 }
 0x231   :  { %203 = vperm.xlu1 %1141, %v136_v23  }
 0x235   :  { %1142 = vset.pattern.permute.xlu1 %v1778_v35 }
 0x236   :  { %208 = vperm.xlu1 %1142, %v136_v23  }
 0x23a   :  { %1144 = vset.pattern.permute.xlu1 %v1764_v36 }
 0x23b   :  { %218 = vperm.xlu1 %1144, %v136_v23  }
 0x23f   :  { %1145 = vset.pattern.permute.xlu1 %v1774_v37 }
 0x240   :  { %223 = vperm.xlu1 %1145, %v136_v23  }
 0x244   :  { %1146 = vset.pattern.permute.xlu1 %v1762_v0 }
 0x28d   :  { %v149_v38 = vpop.permute.xlu1 %148  ;;  %v154_v43 = vpop.permute.xlu0 %153 }
 0x28e   :  { %v151_v48 = vmul.f32 %v149_v38, %v1425_v8  ;;  %v156_v52 = vmul.f32 %v154_v43, %v1427_v9 }
 0x292   :  { %v159_v39 = vpop.permute.xlu1 %158  ;;  %v169_v45 = vpop.permute.xlu0 %168 }
 0x293   :  { %v161_v16 = vmul.f32 %v159_v39, %v1412_v61  ;;  %v171_v39 = vmul.f32 %v169_v45, %v1429_v10 }
 0x295   :  { %v228_v53 = vadd.f32 %v161_v16, %v156_v52  ;;  %v1461_v16 = vrot.slane %v39_v1, %v70_v63 }
 0x297   :  { %v164_v40 = vpop.permute.xlu1 %163  ;;  %v184_v50 = vpop.permute.xlu0 %183 }
 0x298   :  { %v166_v17 = vmul.f32 %v164_v40, %v1414_v62 }
 0x29a   :  { %v229_v57 = vadd.f32 %v171_v39, %v166_v17 }
 0x29c   :  { %v174_v42 = vpop.permute.xlu1 %173  ;;  %v199_v4 = vpop.permute.xlu0 %198 }
 0x29d   :  { %v176_v23 = vmul.f32 %v174_v42, %v1420_v5  ;;  %v201_v40 = vmul.f32 %v199_v4, %v1431_v11 }
 0x2a1   :  { %v179_v44 = vpop.permute.xlu1 %178  ;;  %v214_v56 = vpop.permute.xlu0 %213 }
 0x2a2   :  { %v181_v12 = vmul.f32 %v179_v44, %v1410_v60  ;;  %v1448_v44 = vrot.slane %v39_v1, %v66_v51  ;;  %v186_v51 = vmul.f32 %v184_v50, %v1440_v21  ;;  %v216_v38 = vmul.f32 %v214_v56, %v1442_v22 }
 0x2a4   :  { %v230_v55 = vadd.f32 %v181_v12, %v176_v23 }
 0x2a6   :  { %v189_v46 = vpop.permute.xlu1 %188  ;;  %v236_v12 = vadd.f32 %v230_v55, %v229_v57 }
 0x2a7   :  { %v191_v54 = vmul.f32 %v189_v46, %v1434_v13 }
 0x2a9   :  { %v231_v23 = vadd.f32 %v191_v54, %v186_v51 }
 0x2ab   :  { %v194_v49 = vpop.permute.xlu1 %193 }
 0x2ac   :  { %v196_v41 = vmul.f32 %v194_v49, %v1422_v6  ;;  %v145_v49 = vadd.f32 %v1367_v3, %v144_v7 }
 0x2ae   :  { %v232_v43 = vadd.f32 %v201_v40, %v196_v41  ;;  %v227_v4 = vadd.f32 %v151_v48, %v145_v49 }
 0x2b0   :  { %v204_v59 = vpop.permute.xlu1 %203  ;;  %v237_v30 = vadd.f32 %v232_v43, %v231_v23 }
 0x2b1   :  { %v206_v45 = vmul.f32 %v204_v59, %v1446_v47 }
 0x2b5   :  { %v209_v15 = vpop.permute.xlu1 %208 }
 0x2b6   :  { %v211_v42 = vmul.f32 %v209_v15, %v1436_v14  ;;  %v235_v15 = vadd.f32 %v228_v53, %v227_v4 }
 0x2b8   :  { %v233_v46 = vadd.f32 %v211_v42, %v206_v45  ;;  %v239_v50 = vadd.f32 %v236_v12, %v235_v15 }
 0x2ba   :  { %v219_v58 = vpop.permute.xlu1 %218 }
 0x2bb   :  { %v221_v0 = vmul.f32 %v219_v58, %v1448_v44  ;;  %v1783_v58 = vmov 62  }
 0x2bd   :  { %v234_v36 = vadd.f32 %v221_v0, %v216_v38  ;;  %v1784_v38 = vmov 0  }
 0x2bf   :  { %v238_v7 = vadd.f32 %v234_v36, %v233_v46  ;;  %v224_v17 = vpop.permute.xlu1 %223 }
 0x2c0   :  { %v226_v39 = vmul.f32 %v224_v17, %v1461_v16 }
 0x2c1   :  { %v240_v52 = vadd.f32 %v238_v7, %v237_v30  ;;  %v1088_v30 = vld [vmem:[%s1755_s0 + $0x4] sm:$0x3] }
 0x2c3   :  { %v241_v41 = vadd.f32 %v240_v52, %v239_v50 }
 0x2c5   :  { %v242_v56 = vadd.f32 %v241_v41, %v226_v39 }
 0x2c7   :  { %v1086_v59 = vmul.f32 -1.442695, %v242_v56 }
 0x2c9   :  { %1254 = vpow2.f32 %v1086_v59 }
 0x2d3   :  { %v1255_v40 = vpop.eup %1254 }
 0x2d4   :  { %v246_v48 = vadd.f32 1.0, %v1255_v40 }
 0x2d6   :  { %1256 = vrcp.f32 %v246_v48 }
 0x2e0   :  { %v1257_v55 = vpop.eup %1256 }
 0x2e1   :  { %v249_v54 = vmul.f32 2.0, %v1257_v55  ;;  %v251_v1 = vmul.f32 %v1257_v55, %v1376_v18  ;;  %v1782_v18 = vmov 61  }
 0x2e3   :  { %v1087_v0 = vadd.f32 -1.0, %v249_v54 }
 0x2e5   :  { %253 = vrot.lane.b32.xlu0 %v1087_v0, %s1299_s27 }
 0x357   :  { %v254_v36 = vpop.permute.xlu0 %253 }
 0x358   :  { %v256_v63 = vmul.f32 %v1257_v55, %v254_v36 }
 0x35a   :  { %258 = vrot.lane.b32.xlu1 %v256_v63, %s1300_s30 }
 0x35e   :  { %272 = vperm.xlu1 %1146, %v1088_v30  }
 0x362   :  { %1148 = vset.pattern.permute.xlu1 %v1302_v20 }
 0x3cc   :  { %v259_v42 = vpop.permute.xlu1 %258 }
 0x3cd   :  { %v1471_v49 = vadd.f32 %v259_v42, %v251_v1 }
 0x3cf   :  { %1258 = vtanh.f32 %v1471_v49 }
 0x3d9   :  { %v1259_v53 = vpop.eup %1258 }
 0x3da   :  { %264 = vrot.lane.b32.xlu0 %v1259_v53, %s1303_s7 }
 0x3dd   :  { %v273_v43 = vpop.permute.xlu1 %272 }
 0x3de   :  { %v275_v40 = vmul.f32 %v1362_v2, %v273_v43 }
 0x3e0   :  { %v276_v43 = vadd.f32 %v1367_v3, %v275_v40 }
 0x44c   :  { %v265_v57 = vpop.permute.xlu0 %264 }
 0x44d   :  { %v267_v51 = vmul.f32 %v1257_v55, %v265_v57 }
 0x44f   :  { %284 = vperm.xlu1 %1148, %v267_v51   ;;  %279 = vperm.xlu0 %1147, %v267_v51  }
 0x453   :  { %1149 = vset.pattern.permute.xlu1 %v1305_v25  ;;  %1150 = vset.pattern.permute.xlu0 %v1307_v27 }
 0x454   :  { %289 = vperm.xlu1 %1149, %v267_v51   ;;  %294 = vperm.xlu0 %1150, %v267_v51  }
 0x458   :  { %1151 = vset.pattern.permute.xlu1 %v1304_v24  ;;  %1153 = vset.pattern.permute.xlu0 %v1311_v31 }
 0x459   :  { %299 = vperm.xlu1 %1151, %v267_v51   ;;  %309 = vperm.xlu0 %1153, %v267_v51  }
 0x45d   :  { %1152 = vset.pattern.permute.xlu1 %v1309_v29  ;;  %1156 = vset.pattern.permute.xlu0 %v1313_v33 }
 0x45e   :  { %304 = vperm.xlu1 %1152, %v267_v51   ;;  %324 = vperm.xlu0 %1156, %v267_v51  }
 0x462   :  { %1154 = vset.pattern.permute.xlu1 %v1780_v26  ;;  %1159 = vset.pattern.permute.xlu0 %v1778_v35 }
 0x463   :  { %314 = vperm.xlu1 %1154, %v267_v51   ;;  %339 = vperm.xlu0 %1159, %v267_v51  }
 0x467   :  { %1155 = vset.pattern.permute.xlu1 %v1776_v32  ;;  %1162 = vset.pattern.permute.xlu0 %v1774_v37 }
 0x468   :  { %319 = vperm.xlu1 %1155, %v267_v51   ;;  %354 = vperm.xlu0 %1162, %v267_v51  }
 0x46c   :  { %1157 = vset.pattern.permute.xlu1 %v1772_v28  ;;  %1164 = vset.pattern.permute.xlu0 %v1770_v19 }
 0x46d   :  { %329 = vperm.xlu1 %1157, %v267_v51  }
 0x471   :  { %1158 = vset.pattern.permute.xlu1 %v1768_v34 }
 0x472   :  { %334 = vperm.xlu1 %1158, %v267_v51  }
 0x476   :  { %1160 = vset.pattern.permute.xlu1 %v1782_v18 }
 0x477   :  { %344 = vperm.xlu1 %1160, %v267_v51  }
 0x47b   :  { %1161 = vset.pattern.permute.xlu1 %v1783_v58 }
 0x47c   :  { %349 = vperm.xlu1 %1161, %v267_v51  }
 0x480   :  { %1163 = vset.pattern.permute.xlu1 %v1784_v38 }
 0x4ce   :  { %v285_v45 = vpop.permute.xlu1 %284  ;;  %v280_v46 = vpop.permute.xlu0 %279 }
 0x4cf   :  { %v282_v63 = vmul.f32 %v280_v46, %v1425_v8  ;;  %v287_v30 = vmul.f32 %v285_v45, %v1427_v9 }
 0x4d3   :  { %v290_v4 = vpop.permute.xlu1 %289  ;;  %v295_v7 = vpop.permute.xlu0 %294 }
 0x4d4   :  { %v292_v48 = vmul.f32 %v290_v4, %v1412_v61  ;;  %v297_v1 = vmul.f32 %v295_v7, %v1414_v62 }
 0x4d6   :  { %v359_v4 = vadd.f32 %v292_v48, %v287_v30 }
 0x4d8   :  { %v300_v12 = vpop.permute.xlu1 %299  ;;  %v310_v50 = vpop.permute.xlu0 %309 }
 0x4d9   :  { %v302_v55 = vmul.f32 %v300_v12, %v1429_v10  ;;  %v312_v54 = vmul.f32 %v310_v50, %v1410_v60 }
 0x4db   :  { %v360_v12 = vadd.f32 %v302_v55, %v297_v1 }
 0x4dd   :  { %v305_v23 = vpop.permute.xlu1 %304  ;;  %v325_v41 = vpop.permute.xlu0 %324 }
 0x4de   :  { %v307_v56 = vmul.f32 %v305_v23, %v1420_v5  ;;  %v327_v42 = vmul.f32 %v325_v41, %v1422_v6  ;;  %v358_v41 = vadd.f32 %v282_v63, %v276_v43 }
 0x4e0   :  { %v361_v53 = vadd.f32 %v312_v54, %v307_v56 }
 0x4e2   :  { %v315_v15 = vpop.permute.xlu1 %314  ;;  %v340_v0 = vpop.permute.xlu0 %339  ;;  %v367_v56 = vadd.f32 %v361_v53, %v360_v12 }
 0x4e3   :  { %v342_v23 = vmul.f32 %v340_v0, %v1436_v14  ;;  %v317_v46 = vmul.f32 %v315_v15, %v1440_v21 }
 0x4e7   :  { %v320_v17 = vpop.permute.xlu1 %319  ;;  %v355_v48 = vpop.permute.xlu0 %354 }
 0x4e8   :  { %v322_v57 = vmul.f32 %v320_v17, %v1434_v13  ;;  %v357_v0 = vmul.f32 %v355_v48, %v1461_v16 }
 0x4ea   :  { %v362_v54 = vadd.f32 %v322_v57, %v317_v46 }
 0x4ec   :  { %v330_v52 = vpop.permute.xlu1 %329 }
 0x4ed   :  { %v332_v36 = vmul.f32 %v330_v52, %v1431_v11 }
 0x4ef   :  { %v363_v52 = vadd.f32 %v332_v36, %v327_v42 }
 0x4f1   :  { %v335_v39 = vpop.permute.xlu1 %334  ;;  %v368_v19 = vadd.f32 %v363_v52, %v362_v54  ;;  %v1786_v52 = vmov 59  }
 0x4f2   :  { %v337_v51 = vmul.f32 %v335_v39, %v1446_v47  ;;  %v366_v39 = vadd.f32 %v359_v4, %v358_v41 }
 0x4f4   :  { %v364_v17 = vadd.f32 %v342_v23, %v337_v51  ;;  %v370_v55 = vadd.f32 %v367_v56, %v366_v39 }
 0x4f6   :  { %v345_v59 = vpop.permute.xlu1 %344 }
 0x4f7   :  { %v347_v45 = vmul.f32 %v345_v59, %v1442_v22 }
 0x4fb   :  { %v350_v50 = vpop.permute.xlu1 %349 }
 0x4fc   :  { %v352_v7 = vmul.f32 %v350_v50, %v1448_v44 }
 0x4fe   :  { %v365_v34 = vadd.f32 %v352_v7, %v347_v45 }
 0x500   :  { %v369_v40 = vadd.f32 %v365_v34, %v364_v17 }
 0x502   :  { %v371_v30 = vadd.f32 %v369_v40, %v368_v19  ;;  %v1091_v19 = vld [vmem:[%s1755_s0 + $0x6] sm:$0x3] }
 0x504   :  { %v372_v1 = vadd.f32 %v371_v30, %v370_v55 }
 0x506   :  { %v373_v15 = vadd.f32 %v372_v1, %v357_v0 }
 0x508   :  { %v1089_v36 = vmul.f32 -1.442695, %v373_v15 }
 0x50a   :  { %1260 = vpow2.f32 %v1089_v36 }
 0x514   :  { %v1261_v59 = vpop.eup %1260 }
 0x515   :  { %v377_v42 = vadd.f32 1.0, %v1261_v59 }
 0x517   :  { %1262 = vrcp.f32 %v377_v42 }
 0x521   :  { %v1263_v63 = vpop.eup %1262 }
 0x522   :  { %v380_v53 = vmul.f32 2.0, %v1263_v63  ;;  %v382_v34 = vmul.f32 %v1263_v63, %v1471_v49  ;;  %v1785_v49 = vmov 48  }
 0x524   :  { %v1090_v57 = vadd.f32 -1.0, %v380_v53 }
 0x526   :  { %384 = vrot.lane.b32.xlu1 %v1090_v57, %s1299_s27 }
 0x598   :  { %v385_v51 = vpop.permute.xlu1 %384 }
 0x599   :  { %v387_v43 = vmul.f32 %v1263_v63, %v385_v51 }
 0x59b   :  { %389 = vrot.lane.b32.xlu1 %v387_v43, %s1300_s30 }
 0x59f   :  { %403 = vperm.xlu1 %1163, %v1091_v19  }
 0x5a3   :  { %1165 = vset.pattern.permute.xlu1 %v1302_v20 }
 0x60d   :  { %v390_v4 = vpop.permute.xlu1 %389 }
 0x60e   :  { %v1516_v12 = vadd.f32 %v390_v4, %v382_v34 }
 0x610   :  { %1264 = vtanh.f32 %v1516_v12 }
 0x61a   :  { %v1265_v23 = vpop.eup %1264 }
 0x61b   :  { %395 = vrot.lane.b32.xlu0 %v1265_v23, %s1303_s7 }
 0x61e   :  { %v404_v45 = vpop.permute.xlu1 %403 }
 0x61f   :  { %v406_v59 = vmul.f32 %v1362_v2, %v404_v45 }
 0x621   :  { %v407_v45 = vadd.f32 %v1367_v3, %v406_v59 }
 0x68d   :  { %v396_v50 = vpop.permute.xlu0 %395 }
 0x68e   :  { %v398_v46 = vmul.f32 %v1263_v63, %v396_v50 }
 0x690   :  { %415 = vperm.xlu1 %1165, %v398_v46   ;;  %410 = vperm.xlu0 %1164, %v398_v46  }
 0x694   :  { %1166 = vset.pattern.permute.xlu1 %v1305_v25  ;;  %1167 = vset.pattern.permute.xlu0 %v1307_v27 }
 0x695   :  { %420 = vperm.xlu1 %1166, %v398_v46   ;;  %425 = vperm.xlu0 %1167, %v398_v46  }
 0x699   :  { %1168 = vset.pattern.permute.xlu1 %v1304_v24  ;;  %1170 = vset.pattern.permute.xlu0 %v1311_v31 }
 0x69a   :  { %430 = vperm.xlu1 %1168, %v398_v46   ;;  %440 = vperm.xlu0 %1170, %v398_v46  }
 0x69e   :  { %1169 = vset.pattern.permute.xlu1 %v1309_v29  ;;  %1173 = vset.pattern.permute.xlu0 %v1313_v33 }
 0x69f   :  { %435 = vperm.xlu1 %1169, %v398_v46   ;;  %455 = vperm.xlu0 %1173, %v398_v46  }
 0x6a3   :  { %1171 = vset.pattern.permute.xlu1 %v1780_v26  ;;  %1176 = vset.pattern.permute.xlu0 %v1778_v35 }
 0x6a4   :  { %445 = vperm.xlu1 %1171, %v398_v46   ;;  %470 = vperm.xlu0 %1176, %v398_v46  }
 0x6a8   :  { %1172 = vset.pattern.permute.xlu1 %v1776_v32  ;;  %1179 = vset.pattern.permute.xlu0 %v1774_v37 }
 0x6a9   :  { %450 = vperm.xlu1 %1172, %v398_v46   ;;  %485 = vperm.xlu0 %1179, %v398_v46  }
 0x6ad   :  { %1174 = vset.pattern.permute.xlu1 %v1772_v28  ;;  %1181 = vset.pattern.permute.xlu0 %v1785_v49 }
 0x6ae   :  { %460 = vperm.xlu1 %1174, %v398_v46  }
 0x6b2   :  { %1175 = vset.pattern.permute.xlu1 %v1786_v52 }
 0x6b3   :  { %465 = vperm.xlu1 %1175, %v398_v46  }
 0x6b7   :  { %1177 = vset.pattern.permute.xlu1 %v1782_v18 }
 0x6b8   :  { %475 = vperm.xlu1 %1177, %v398_v46  }
 0x6bc   :  { %1178 = vset.pattern.permute.xlu1 %v1783_v58 }
 0x6bd   :  { %480 = vperm.xlu1 %1178, %v398_v46  }
 0x6c1   :  { %1180 = vset.pattern.permute.xlu1 %v1784_v38 }
 0x70f   :  { %v416_v7 = vpop.permute.xlu1 %415  ;;  %v411_v17 = vpop.permute.xlu0 %410 }
 0x710   :  { %v413_v43 = vmul.f32 %v411_v17, %v1425_v8  ;;  %v418_v19 = vmul.f32 %v416_v7, %v1427_v9 }
 0x714   :  { %v421_v41 = vpop.permute.xlu1 %420  ;;  %v426_v40 = vpop.permute.xlu0 %425 }
 0x715   :  { %v423_v42 = vmul.f32 %v421_v41, %v1412_v61  ;;  %v428_v34 = vmul.f32 %v426_v40, %v1414_v62 }
 0x717   :  { %v490_v41 = vadd.f32 %v423_v42, %v418_v19 }
 0x719   :  { %v431_v56 = vpop.permute.xlu1 %430  ;;  %v441_v55 = vpop.permute.xlu0 %440 }
 0x71a   :  { %v433_v63 = vmul.f32 %v431_v56, %v1429_v10  ;;  %v443_v53 = vmul.f32 %v441_v55, %v1410_v60 }
 0x71c   :  { %v491_v56 = vadd.f32 %v433_v63, %v428_v34 }
 0x71e   :  { %v436_v54 = vpop.permute.xlu1 %435  ;;  %v456_v1 = vpop.permute.xlu0 %455 }
 0x71f   :  { %v438_v15 = vmul.f32 %v436_v54, %v1420_v5  ;;  %v458_v4 = vmul.f32 %v456_v1, %v1422_v6  ;;  %v489_v1 = vadd.f32 %v413_v43, %v407_v45 }
 0x721   :  { %v492_v23 = vadd.f32 %v443_v53, %v438_v15 }
 0x723   :  { %v446_v39 = vpop.permute.xlu1 %445  ;;  %v471_v57 = vpop.permute.xlu0 %470  ;;  %v498_v15 = vadd.f32 %v492_v23, %v491_v56 }
 0x724   :  { %v473_v54 = vmul.f32 %v471_v57, %v1436_v14  ;;  %v448_v17 = vmul.f32 %v446_v39, %v1440_v21 }
 0x728   :  { %v451_v48 = vpop.permute.xlu1 %450  ;;  %v486_v42 = vpop.permute.xlu0 %485 }
 0x729   :  { %v453_v50 = vmul.f32 %v451_v48, %v1434_v13  ;;  %v488_v57 = vmul.f32 %v486_v42, %v1461_v16 }
 0x72b   :  { %v493_v53 = vadd.f32 %v453_v50, %v448_v17 }
 0x72d   :  { %v461_v30 = vpop.permute.xlu1 %460 }
 0x72e   :  { %v463_v51 = vmul.f32 %v461_v30, %v1431_v11 }
 0x730   :  { %v494_v30 = vadd.f32 %v463_v51, %v458_v4 }
 0x732   :  { %v466_v0 = vpop.permute.xlu1 %465  ;;  %v499_v37 = vadd.f32 %v494_v30, %v493_v53  ;;  %v1788_v30 = vmov 58  }
 0x733   :  { %v468_v46 = vmul.f32 %v466_v0, %v1446_v47  ;;  %v497_v0 = vadd.f32 %v490_v41, %v489_v1 }
 0x735   :  { %v495_v48 = vadd.f32 %v473_v54, %v468_v46  ;;  %v501_v63 = vadd.f32 %v498_v15, %v497_v0 }
 0x737   :  { %v476_v36 = vpop.permute.xlu1 %475 }
 0x738   :  { %v478_v7 = vmul.f32 %v476_v36, %v1442_v22 }
 0x73c   :  { %v481_v55 = vpop.permute.xlu1 %480 }
 0x73d   :  { %v483_v40 = vmul.f32 %v481_v55, %v1448_v44 }
 0x73f   :  { %v496_v28 = vadd.f32 %v483_v40, %v478_v7 }
 0x741   :  { %v500_v59 = vadd.f32 %v496_v28, %v495_v48  ;;  %v1094_v28 = vld [vmem:[%s1755_s0 + $0x8] sm:$0x3] }
 0x743   :  { %v502_v19 = vadd.f32 %v500_v59, %v499_v37 }
 0x745   :  { %v503_v34 = vadd.f32 %v502_v19, %v501_v63 }
 0x747   :  { %v504_v39 = vadd.f32 %v503_v34, %v488_v57 }
 0x749   :  { %v1092_v51 = vmul.f32 -1.442695, %v504_v39 }
 0x74b   :  { %1266 = vpow2.f32 %v1092_v51 }
 0x755   :  { %v1267_v36 = vpop.eup %1266 }
 0x756   :  { %v508_v4 = vadd.f32 1.0, %v1267_v36 }
 0x758   :  { %1268 = vrcp.f32 %v508_v4 }
 0x762   :  { %v1269_v43 = vpop.eup %1268 }
 0x763   :  { %v511_v23 = vmul.f32 2.0, %v1269_v43  ;;  %v513_v37 = vmul.f32 %v1269_v43, %v1516_v12  ;;  %v1787_v12 = vmov 63  }
 0x765   :  { %v1093_v50 = vadd.f32 -1.0, %v511_v23 }
 0x767   :  { %515 = vrot.lane.b32.xlu1 %v1093_v50, %s1299_s27 }
 0x7d9   :  { %v516_v46 = vpop.permute.xlu1 %515 }
 0x7da   :  { %v518_v45 = vmul.f32 %v1269_v43, %v516_v46 }
 0x7dc   :  { %520 = vrot.lane.b32.xlu1 %v518_v45, %s1300_s30 }
 0x7e0   :  { %534 = vperm.xlu1 %1180, %v1094_v28  }
 0x7e4   :  { %1182 = vset.pattern.permute.xlu1 %v1302_v20 }
 0x84e   :  { %v521_v41 = vpop.permute.xlu1 %520 }
 0x84f   :  { %v1561_v56 = vadd.f32 %v521_v41, %v513_v37 }
 0x851   :  { %1270 = vtanh.f32 %v1561_v56 }
 0x85b   :  { %v1271_v54 = vpop.eup %1270 }
 0x85c   :  { %526 = vrot.lane.b32.xlu0 %v1271_v54, %s1303_s7 }
 0x85f   :  { %v535_v7 = vpop.permute.xlu1 %534 }
 0x860   :  { %v537_v36 = vmul.f32 %v1362_v2, %v535_v7 }
 0x8ce   :  { %v527_v55 = vpop.permute.xlu0 %526 }
 0x8cf   :  { %v529_v17 = vmul.f32 %v1269_v43, %v527_v55 }
 0x8d1   :  { %546 = vperm.xlu1 %1182, %v529_v17   ;;  %541 = vperm.xlu0 %1181, %v529_v17  }
 0x8d5   :  { %1183 = vset.pattern.permute.xlu1 %v1305_v25  ;;  %1184 = vset.pattern.permute.xlu0 %v1307_v27 }
 0x8d6   :  { %551 = vperm.xlu1 %1183, %v529_v17   ;;  %556 = vperm.xlu0 %1184, %v529_v17  }
 0x8da   :  { %1185 = vset.pattern.permute.xlu1 %v1304_v24  ;;  %1187 = vset.pattern.permute.xlu0 %v1311_v31 }
 0x8db   :  { %561 = vperm.xlu1 %1185, %v529_v17   ;;  %571 = vperm.xlu0 %1187, %v529_v17  }
 0x8df   :  { %1186 = vset.pattern.permute.xlu1 %v1309_v29  ;;  %1190 = vset.pattern.permute.xlu0 %v1313_v33 }
 0x8e0   :  { %566 = vperm.xlu1 %1186, %v529_v17   ;;  %586 = vperm.xlu0 %1190, %v529_v17  }
 0x8e4   :  { %1188 = vset.pattern.permute.xlu1 %v1780_v26  ;;  %1193 = vset.pattern.permute.xlu0 %v1778_v35 }
 0x8e5   :  { %576 = vperm.xlu1 %1188, %v529_v17   ;;  %601 = vperm.xlu0 %1193, %v529_v17  }
 0x8e9   :  { %1189 = vset.pattern.permute.xlu1 %v1776_v32  ;;  %1196 = vset.pattern.permute.xlu0 %v1787_v12 }
 0x8ea   :  { %581 = vperm.xlu1 %1189, %v529_v17   ;;  %616 = vperm.xlu0 %1196, %v529_v17  }
 0x8ee   :  { %1191 = vset.pattern.permute.xlu1 %v1788_v30  ;;  %1198 = vset.pattern.permute.xlu0 %v1785_v49 }
 0x8ef   :  { %591 = vperm.xlu1 %1191, %v529_v17  }
 0x8f3   :  { %1192 = vset.pattern.permute.xlu1 %v1786_v52 }
 0x8f4   :  { %596 = vperm.xlu1 %1192, %v529_v17  }
 0x8f8   :  { %1194 = vset.pattern.permute.xlu1 %v1782_v18 }
 0x8f9   :  { %606 = vperm.xlu1 %1194, %v529_v17  }
 0x8fd   :  { %1195 = vset.pattern.permute.xlu1 %v1783_v58 }
 0x8fe   :  { %611 = vperm.xlu1 %1195, %v529_v17   ;;  %v538_v17 = vadd.f32 %v1367_v3, %v537_v36 }
 0x902   :  { %1197 = vset.pattern.permute.xlu1 %v1784_v38 }
 0x950   :  { %v547_v40 = vpop.permute.xlu1 %546  ;;  %v542_v48 = vpop.permute.xlu0 %541 }
 0x951   :  { %v544_v45 = vmul.f32 %v542_v48, %v1425_v8  ;;  %v549_v28 = vmul.f32 %v547_v40, %v1427_v9 }
 0x955   :  { %v552_v1 = vpop.permute.xlu1 %551  ;;  %v557_v59 = vpop.permute.xlu0 %556 }
 0x956   :  { %v554_v4 = vmul.f32 %v552_v1, %v1412_v61  ;;  %v559_v37 = vmul.f32 %v557_v59, %v1414_v62 }
 0x958   :  { %v621_v7 = vadd.f32 %v554_v4, %v549_v28 }
 0x95a   :  { %v562_v15 = vpop.permute.xlu1 %561  ;;  %v572_v63 = vpop.permute.xlu0 %571 }
 0x95b   :  { %v564_v43 = vmul.f32 %v562_v15, %v1429_v10  ;;  %v574_v23 = vmul.f32 %v572_v63, %v1410_v60 }
 0x95d   :  { %v622_v1 = vadd.f32 %v564_v43, %v559_v37 }
 0x95f   :  { %v567_v53 = vpop.permute.xlu1 %566  ;;  %v587_v34 = vpop.permute.xlu0 %586 }
 0x960   :  { %v569_v39 = vmul.f32 %v567_v53, %v1420_v5  ;;  %v589_v41 = vmul.f32 %v587_v34, %v1422_v6 }
 0x962   :  { %v623_v54 = vadd.f32 %v574_v23, %v569_v39 }
 0x964   :  { %v577_v0 = vpop.permute.xlu1 %576  ;;  %v602_v50 = vpop.permute.xlu0 %601  ;;  %v629_v34 = vadd.f32 %v623_v54, %v622_v1 }
 0x965   :  { %v604_v15 = vmul.f32 %v602_v50, %v1436_v14  ;;  %v579_v48 = vmul.f32 %v577_v0, %v1440_v21 }
 0x969   :  { %v582_v42 = vpop.permute.xlu1 %581  ;;  %v617_v36 = vpop.permute.xlu0 %616 }
 0x96a   :  { %v584_v2 = vmul.f32 %v582_v42, %v1434_v13  ;;  %v619_v50 = vmul.f32 %v617_v36, %v1461_v16 }
 0x96c   :  { %v624_v39 = vadd.f32 %v584_v2, %v579_v48 }
 0x96e   :  { %v592_v19 = vpop.permute.xlu1 %591 }
 0x96f   :  { %v594_v46 = vmul.f32 %v592_v19, %v1431_v11  ;;  %v620_v19 = vadd.f32 %v544_v45, %v538_v17 }
 0x971   :  { %v625_v63 = vadd.f32 %v594_v46, %v589_v41 }
 0x973   :  { %v597_v57 = vpop.permute.xlu1 %596  ;;  %v630_v32 = vadd.f32 %v625_v63, %v624_v39 }
 0x974   :  { %v599_v55 = vmul.f32 %v597_v57, %v1446_v47  ;;  %v628_v57 = vadd.f32 %v621_v7, %v620_v19 }
 0x976   :  { %v626_v42 = vadd.f32 %v604_v15, %v599_v55  ;;  %v632_v4 = vadd.f32 %v629_v34, %v628_v57 }
 0x978   :  { %v607_v51 = vpop.permute.xlu1 %606 }
 0x979   :  { %v609_v40 = vmul.f32 %v607_v51, %v1442_v22 }
 0x97d   :  { %v612_v53 = vpop.permute.xlu1 %611 }
 0x97e   :  { %v614_v59 = vmul.f32 %v612_v53, %v1448_v44 }
 0x980   :  { %v627_v23 = vadd.f32 %v614_v59, %v609_v40 }
 0x982   :  { %v631_v3 = vadd.f32 %v627_v23, %v626_v42 }
 0x984   :  { %v633_v43 = vadd.f32 %v631_v3, %v630_v32  ;;  %v1097_v32 = vld [vmem:[%s1755_s0 + $0xa] sm:$0x3] }
 0x986   :  { %v634_v28 = vadd.f32 %v633_v43, %v632_v4 }
 0x988   :  { %v635_v0 = vadd.f32 %v634_v28, %v619_v50 }
 0x98a   :  { %v1095_v46 = vmul.f32 -1.442695, %v635_v0  ;;  %v1630_v0 = vld [vmem:[%s1756_s1] ss:$0 sm:$0xff] }
 0x98c   :  { %1272 = vpow2.f32 %v1095_v46 }
 0x996   :  { %v1273_v51 = vpop.eup %1272 }
 0x997   :  { %v639_v37 = vadd.f32 1.0, %v1273_v51 }
 0x999   :  { %1274 = vrcp.f32 %v639_v37 }
 0x9a3   :  { %v1275_v45 = vpop.eup %1274 }
 0x9a4   :  { %v642_v41 = vmul.f32 2.0, %v1275_v45  ;;  %v644_v17 = vmul.f32 %v1275_v45, %v1561_v56  ;;  %v1789_v56 = vmov 56  }
 0x9a6   :  { %v1096_v54 = vadd.f32 -1.0, %v642_v41 }
 0x9a8   :  { %646 = vrot.lane.b32.xlu1 %v1096_v54, %s1299_s27 }
 0xa1a   :  { %v647_v2 = vpop.permute.xlu1 %646 }
 0xa1b   :  { %v649_v55 = vmul.f32 %v1275_v45, %v647_v2 }
 0xa1d   :  { %651 = vrot.lane.b32.xlu1 %v649_v55, %s1300_s30 }
 0xa21   :  { %665 = vperm.xlu1 %1197, %v1097_v32  }
 0xa25   :  { %1199 = vset.pattern.permute.xlu1 %v1302_v20 }
 0xa8f   :  { %v652_v7 = vpop.permute.xlu1 %651 }
 0xa90   :  { %v1606_v1 = vadd.f32 %v652_v7, %v644_v17 }
 0xa92   :  { %1276 = vtanh.f32 %v1606_v1 }
 0xa9c   :  { %v1277_v15 = vpop.eup %1276 }
 0xa9d   :  { %657 = vrot.lane.b32.xlu0 %v1277_v15, %s1303_s7 }
 0xaa0   :  { %v666_v63 = vpop.permute.xlu1 %665 }
 0xaa1   :  { %v668_v46 = vmul.f32 %v1630_v0, %v666_v63 }
 0xb0f   :  { %v658_v53 = vpop.permute.xlu0 %657 }
 0xb10   :  { %v660_v48 = vmul.f32 %v1275_v45, %v658_v53 }
 0xb12   :  { %677 = vperm.xlu1 %1199, %v660_v48   ;;  %672 = vperm.xlu0 %1198, %v660_v48  }
 0xb16   :  { %1200 = vset.pattern.permute.xlu1 %v1305_v25  ;;  %1201 = vset.pattern.permute.xlu0 %v1307_v27 }
 0xb17   :  { %682 = vperm.xlu1 %1200, %v660_v48   ;;  %687 = vperm.xlu0 %1201, %v660_v48  }
 0xb1b   :  { %1202 = vset.pattern.permute.xlu1 %v1304_v24  ;;  %1204 = vset.pattern.permute.xlu0 %v1311_v31 }
 0xb1c   :  { %692 = vperm.xlu1 %1202, %v660_v48   ;;  %702 = vperm.xlu0 %1204, %v660_v48  }
 0xb20   :  { %1203 = vset.pattern.permute.xlu1 %v1309_v29  ;;  %1207 = vset.pattern.permute.xlu0 %v1313_v33 }
 0xb21   :  { %697 = vperm.xlu1 %1203, %v660_v48   ;;  %717 = vperm.xlu0 %1207, %v660_v48  }
 0xb25   :  { %1205 = vset.pattern.permute.xlu1 %v1780_v26  ;;  %1210 = vset.pattern.permute.xlu0 %v1778_v35 }
 0xb26   :  { %707 = vperm.xlu1 %1205, %v660_v48   ;;  %732 = vperm.xlu0 %1210, %v660_v48  }
 0xb2a   :  { %1206 = vset.pattern.permute.xlu1 %v1789_v56  ;;  %1213 = vset.pattern.permute.xlu0 %v1787_v12 }
 0xb2b   :  { %712 = vperm.xlu1 %1206, %v660_v48   ;;  %747 = vperm.xlu0 %1213, %v660_v48  }
 0xb2f   :  { %1208 = vset.pattern.permute.xlu1 %v1788_v30  ;;  %1215 = vset.pattern.permute.xlu0 %v1785_v49 }
 0xb30   :  { %722 = vperm.xlu1 %1208, %v660_v48  }
 0xb34   :  { %1209 = vset.pattern.permute.xlu1 %v1786_v52 }
 0xb35   :  { %727 = vperm.xlu1 %1209, %v660_v48  }
 0xb39   :  { %1211 = vset.pattern.permute.xlu1 %v1782_v18 }
 0xb3a   :  { %737 = vperm.xlu1 %1211, %v660_v48  }
 0xb3e   :  { %1212 = vset.pattern.permute.xlu1 %v1783_v58 }
 0xb3f   :  { %742 = vperm.xlu1 %1212, %v660_v48   ;;  %v1646_v48 = vld [vmem:[%s1757_s3] ss:$0 sm:$0xff] }
 0xb40   :  { %v669_v63 = vadd.f32 %v1646_v48, %v668_v46 }
 0xb43   :  { %1214 = vset.pattern.permute.xlu1 %v1784_v38 }
 0xb91   :  { %v678_v40 = vpop.permute.xlu1 %677  ;;  %v673_v39 = vpop.permute.xlu0 %672 }
 0xb92   :  { %v675_v2 = vmul.f32 %v673_v39, %v1425_v8  ;;  %v680_v55 = vmul.f32 %v678_v40, %v1427_v9 }
 0xb96   :  { %v683_v59 = vpop.permute.xlu1 %682  ;;  %v688_v23 = vpop.permute.xlu0 %687 }
 0xb97   :  { %v685_v51 = vmul.f32 %v683_v59, %v1412_v61  ;;  %v690_v32 = vmul.f32 %v688_v23, %v1414_v62 }
 0xb99   :  { %v752_v59 = vadd.f32 %v685_v51, %v680_v55 }
 0xb9b   :  { %v693_v19 = vpop.permute.xlu1 %692  ;;  %v703_v3 = vpop.permute.xlu0 %702 }
 0xb9c   :  { %v695_v37 = vmul.f32 %v693_v19, %v1429_v10  ;;  %v705_v45 = vmul.f32 %v703_v3, %v1410_v60 }
 0xb9e   :  { %v753_v19 = vadd.f32 %v695_v37, %v690_v32 }
 0xba0   :  { %v698_v34 = vpop.permute.xlu1 %697  ;;  %v718_v43 = vpop.permute.xlu0 %717 }
 0xba1   :  { %v700_v50 = vmul.f32 %v698_v34, %v1420_v5  ;;  %v720_v17 = vmul.f32 %v718_v43, %v1422_v6 }
 0xba3   :  { %v754_v7 = vadd.f32 %v705_v45, %v700_v50 }
 0xba5   :  { %v708_v42 = vpop.permute.xlu1 %707  ;;  %v733_v41 = vpop.permute.xlu0 %732 }
 0xba6   :  { %v735_v40 = vmul.f32 %v733_v41, %v1436_v14  ;;  %v710_v39 = vmul.f32 %v708_v42, %v1440_v21 }
 0xbaa   :  { %v713_v57 = vpop.permute.xlu1 %712  ;;  %v748_v51 = vpop.permute.xlu0 %747 }
 0xbab   :  { %v715_v15 = vmul.f32 %v713_v57, %v1434_v13  ;;  %v750_v41 = vmul.f32 %v748_v51, %v1461_v16 }
 0xbad   :  { %v755_v43 = vadd.f32 %v715_v15, %v710_v39 }
 0xbaf   :  { %v723_v36 = vpop.permute.xlu1 %722 }
 0xbb0   :  { %v725_v54 = vmul.f32 %v723_v36, %v1431_v11  ;;  %v751_v36 = vadd.f32 %v675_v2, %v669_v63 }
 0xbb2   :  { %v756_v23 = vadd.f32 %v725_v54, %v720_v17  ;;  %v759_v35 = vadd.f32 %v752_v59, %v751_v36 }
 0xbb4   :  { %v728_v4 = vpop.permute.xlu1 %727  ;;  %v761_v26 = vadd.f32 %v756_v23, %v755_v43  ;;  %v1791_v23 = vmov 60  }
 0xbb5   :  { %v730_v53 = vmul.f32 %v728_v4, %v1446_v47  ;;  %v760_v4 = vadd.f32 %v754_v7, %v753_v19 }
 0xbb7   :  { %v757_v50 = vadd.f32 %v735_v40, %v730_v53  ;;  %v763_v37 = vadd.f32 %v760_v4, %v759_v35 }
 0xbb9   :  { %v738_v28 = vpop.permute.xlu1 %737 }
 0xbba   :  { %v740_v3 = vmul.f32 %v738_v28, %v1442_v22 }
 0xbbe   :  { %v743_v34 = vpop.permute.xlu1 %742 }
 0xbbf   :  { %v745_v57 = vmul.f32 %v743_v34, %v1448_v44 }
 0xbc1   :  { %v758_v45 = vadd.f32 %v745_v57, %v740_v3 }
 0xbc3   :  { %v762_v46 = vadd.f32 %v758_v45, %v757_v50 }
 0xbc5   :  { %v764_v55 = vadd.f32 %v762_v46, %v761_v26  ;;  %v1100_v26 = vld [vmem:[%s1755_s0 + $0xc] sm:$0x3] }
 0xbc7   :  { %v765_v32 = vadd.f32 %v764_v55, %v763_v37 }
 0xbc9   :  { %v766_v42 = vadd.f32 %v765_v32, %v750_v41 }
 0xbcb   :  { %v1098_v54 = vmul.f32 -1.442695, %v766_v42 }
 0xbcd   :  { %1278 = vpow2.f32 %v1098_v54 }
 0xbd7   :  { %v1279_v28 = vpop.eup %1278 }
 0xbd8   :  { %v770_v17 = vadd.f32 1.0, %v1279_v28 }
 0xbda   :  { %1280 = vrcp.f32 %v770_v17 }
 0xbe4   :  { %v1281_v2 = vpop.eup %1280 }
 0xbe5   :  { %v773_v7 = vmul.f32 2.0, %v1281_v2  ;;  %v775_v35 = vmul.f32 %v1281_v2, %v1606_v1  ;;  %v1790_v1 = vmov 55  }
 0xbe7   :  { %v1099_v15 = vadd.f32 -1.0, %v773_v7 }
 0xbe9   :  { %777 = vrot.lane.b32.xlu1 %v1099_v15, %s1299_s27 }
 0xc5b   :  { %v778_v53 = vpop.permute.xlu1 %777 }
 0xc5c   :  { %v780_v63 = vmul.f32 %v1281_v2, %v778_v53 }
 0xc5e   :  { %782 = vrot.lane.b32.xlu1 %v780_v63, %s1300_s30 }
 0xc62   :  { %796 = vperm.xlu1 %1214, %v1100_v26  }
 0xc66   :  { %1216 = vset.pattern.permute.xlu1 %v1302_v20 }
 0xcd0   :  { %v783_v59 = vpop.permute.xlu1 %782 }
 0xcd1   :  { %v1661_v19 = vadd.f32 %v783_v59, %v775_v35 }
 0xcd3   :  { %1282 = vtanh.f32 %v1661_v19 }
 0xcdd   :  { %v1283_v40 = vpop.eup %1282 }
 0xcde   :  { %788 = vrot.lane.b32.xlu0 %v1283_v40, %s1303_s7 }
 0xce1   :  { %v797_v3 = vpop.permute.xlu1 %796 }
 0xce2   :  { %v799_v54 = vmul.f32 %v1630_v0, %v797_v3 }
 0xd50   :  { %v789_v34 = vpop.permute.xlu0 %788 }
 0xd51   :  { %v791_v39 = vmul.f32 %v1281_v2, %v789_v34  ;;  %v800_v34 = vadd.f32 %v1646_v48, %v799_v54 }
 0xd53   :  { %808 = vperm.xlu1 %1216, %v791_v39   ;;  %803 = vperm.xlu0 %1215, %v791_v39  }
 0xd57   :  { %1217 = vset.pattern.permute.xlu1 %v1305_v25  ;;  %1218 = vset.pattern.permute.xlu0 %v1307_v27 }
 0xd58   :  { %813 = vperm.xlu1 %1217, %v791_v39   ;;  %818 = vperm.xlu0 %1218, %v791_v39  }
 0xd5c   :  { %1219 = vset.pattern.permute.xlu1 %v1304_v24  ;;  %1221 = vset.pattern.permute.xlu0 %v1311_v31 }
 0xd5d   :  { %823 = vperm.xlu1 %1219, %v791_v39   ;;  %833 = vperm.xlu0 %1221, %v791_v39  }
 0xd61   :  { %1220 = vset.pattern.permute.xlu1 %v1309_v29  ;;  %1224 = vset.pattern.permute.xlu0 %v1313_v33 }
 0xd62   :  { %828 = vperm.xlu1 %1220, %v791_v39   ;;  %848 = vperm.xlu0 %1224, %v791_v39  }
 0xd66   :  { %1222 = vset.pattern.permute.xlu1 %v1790_v1  ;;  %1227 = vset.pattern.permute.xlu0 %v1791_v23 }
 0xd67   :  { %838 = vperm.xlu1 %1222, %v791_v39   ;;  %863 = vperm.xlu0 %1227, %v791_v39  }
 0xd6b   :  { %1223 = vset.pattern.permute.xlu1 %v1789_v56  ;;  %1230 = vset.pattern.permute.xlu0 %v1787_v12 }
 0xd6c   :  { %843 = vperm.xlu1 %1223, %v791_v39   ;;  %878 = vperm.xlu0 %1230, %v791_v39  }
 0xd70   :  { %1225 = vset.pattern.permute.xlu1 %v1788_v30  ;;  %1232 = vset.pattern.permute.xlu0 %v1785_v49 }
 0xd71   :  { %853 = vperm.xlu1 %1225, %v791_v39  }
 0xd75   :  { %1226 = vset.pattern.permute.xlu1 %v1786_v52 }
 0xd76   :  { %858 = vperm.xlu1 %1226, %v791_v39  }
 0xd7a   :  { %1228 = vset.pattern.permute.xlu1 %v1782_v18 }
 0xd7b   :  { %868 = vperm.xlu1 %1228, %v791_v39  }
 0xd7f   :  { %1229 = vset.pattern.permute.xlu1 %v1783_v58 }
 0xd80   :  { %873 = vperm.xlu1 %1229, %v791_v39  }
 0xd84   :  { %1231 = vset.pattern.permute.xlu1 %v1784_v38 }
 0xdd2   :  { %v809_v57 = vpop.permute.xlu1 %808  ;;  %v804_v50 = vpop.permute.xlu0 %803 }
 0xdd3   :  { %v806_v15 = vmul.f32 %v804_v50, %v1425_v8  ;;  %v811_v53 = vmul.f32 %v809_v57, %v1427_v9 }
 0xdd7   :  { %v814_v36 = vpop.permute.xlu1 %813  ;;  %v819_v49 = vpop.permute.xlu0 %818 }
 0xdd8   :  { %v816_v38 = vmul.f32 %v814_v36, %v1412_v61  ;;  %v821_v63 = vmul.f32 %v819_v49, %v1414_v62 }
 0xdda   :  { %v883_v39 = vadd.f32 %v816_v38, %v811_v53 }
 0xddc   :  { %v824_v4 = vpop.permute.xlu1 %823  ;;  %v834_v51 = vpop.permute.xlu0 %833 }
 0xddd   :  { %v826_v28 = vmul.f32 %v824_v4, %v1429_v10  ;;  %v836_v17 = vmul.f32 %v834_v51, %v1410_v60  ;;  %v882_v51 = vadd.f32 %v806_v15, %v800_v34 }
 0xddf   :  { %v884_v3 = vadd.f32 %v826_v28, %v821_v63 }
 0xde1   :  { %v829_v43 = vpop.permute.xlu1 %828  ;;  %v849_v41 = vpop.permute.xlu0 %848 }
 0xde2   :  { %v831_v32 = vmul.f32 %v829_v43, %v1420_v5  ;;  %v851_v26 = vmul.f32 %v849_v41, %v1422_v6 }
 0xde4   :  { %v885_v35 = vadd.f32 %v836_v17, %v831_v32 }
 0xde6   :  { %v839_v45 = vpop.permute.xlu1 %838  ;;  %v864_v2 = vpop.permute.xlu0 %863 }
 0xde7   :  { %v866_v36 = vmul.f32 %v864_v2, %v1436_v14  ;;  %v841_v43 = vmul.f32 %v839_v45, %v1440_v21 }
 0xdeb   :  { %v844_v46 = vpop.permute.xlu1 %843  ;;  %v879_v38 = vpop.permute.xlu0 %878 }
 0xdec   :  { %v846_v59 = vmul.f32 %v844_v46, %v1434_v13  ;;  %v881_v2 = vmul.f32 %v879_v38, %v1461_v16 }
 0xdee   :  { %v886_v41 = vadd.f32 %v846_v59, %v841_v43 }
 0xdf0   :  { %v854_v37 = vpop.permute.xlu1 %853 }
 0xdf1   :  { %v856_v7 = vmul.f32 %v854_v37, %v1431_v11  ;;  %v891_v37 = vadd.f32 %v885_v35, %v884_v3 }
 0xdf3   :  { %v887_v50 = vadd.f32 %v856_v7, %v851_v26 }
 0xdf5   :  { %v859_v55 = vpop.permute.xlu1 %858  ;;  %v892_v17 = vadd.f32 %v887_v50, %v886_v41 }
 0xdf6   :  { %v861_v40 = vmul.f32 %v859_v55, %v1446_v47  ;;  %v890_v55 = vadd.f32 %v883_v39, %v882_v51  ;;  %v1103_v39 = vld [vmem:[%s1755_s0 + $0xe] sm:$0x3] }
 0xdf8   :  { %v888_v46 = vadd.f32 %v866_v36, %v861_v40  ;;  %v894_v28 = vadd.f32 %v891_v37, %v890_v55 }
 0xdfa   :  { %v869_v42 = vpop.permute.xlu1 %868 }
 0xdfb   :  { %v871_v57 = vmul.f32 %v869_v42, %v1442_v22 }
 0xdff   :  { %v874_v4 = vpop.permute.xlu1 %873 }
 0xe00   :  { %v876_v49 = vmul.f32 %v874_v4, %v1448_v44 }
 0xe02   :  { %v889_v32 = vadd.f32 %v876_v49, %v871_v57 }
 0xe04   :  { %v893_v54 = vadd.f32 %v889_v32, %v888_v46 }
 0xe06   :  { %v895_v53 = vadd.f32 %v893_v54, %v892_v17 }
 0xe08   :  { %v896_v63 = vadd.f32 %v895_v53, %v894_v28 }
 0xe0a   :  { %v897_v45 = vadd.f32 %v896_v63, %v881_v2 }
 0xe0c   :  { %v1101_v7 = vmul.f32 -1.442695, %v897_v45 }
 0xe0e   :  { %1284 = vpow2.f32 %v1101_v7 }
 0xe18   :  { %v1285_v42 = vpop.eup %1284 }
 0xe19   :  { %v901_v26 = vadd.f32 1.0, %v1285_v42 }
 0xe1b   :  { %1286 = vrcp.f32 %v901_v26 }
 0xe25   :  { %v1287_v15 = vpop.eup %1286 }
 0xe26   :  { %v904_v35 = vmul.f32 2.0, %v1287_v15  ;;  %v906_v3 = vmul.f32 %v1287_v15, %v1661_v19 }
 0xe28   :  { %v1102_v59 = vadd.f32 -1.0, %v904_v35 }
 0xe2a   :  { %908 = vrot.lane.b32.xlu1 %v1102_v59, %s1299_s27 }
 0xe9c   :  { %v909_v40 = vpop.permute.xlu1 %908 }
 0xe9d   :  { %v911_v34 = vmul.f32 %v1287_v15, %v909_v40 }
 0xe9f   :  { %913 = vrot.lane.b32.xlu1 %v911_v34, %s1300_s30 }
 0xea3   :  { %927 = vperm.xlu1 %1231, %v1103_v39  }
 0xea7   :  { %1233 = vset.pattern.permute.xlu1 %v1302_v20 }
 0xf11   :  { %v914_v36 = vpop.permute.xlu1 %913 }
 0xf12   :  { %v1706_v4 = vadd.f32 %v914_v36, %v906_v3 }
 0xf14   :  { %1288 = vtanh.f32 %v1706_v4 }
 0xf1e   :  { %v1289_v43 = vpop.eup %1288 }
 0xf1f   :  { %919 = vrot.lane.b32.xlu0 %v1289_v43, %s1303_s7 }
 0xf22   :  { %v928_v20 = vpop.permute.xlu1 %927 }
 0xf23   :  { %v930_v49 = vmul.f32 %v1630_v0, %v928_v20 }
 0xf91   :  { %v920_v50 = vpop.permute.xlu0 %919 }
 0xf92   :  { %v922_v57 = vmul.f32 %v1287_v15, %v920_v50 }
 0xf94   :  { %939 = vperm.xlu1 %1233, %v922_v57   ;;  %934 = vperm.xlu0 %1232, %v922_v57  }
 0xf98   :  { %1234 = vset.pattern.permute.xlu1 %v1305_v25  ;;  %1235 = vset.pattern.permute.xlu0 %v1307_v27 }
 0xf99   :  { %944 = vperm.xlu1 %1234, %v922_v57   ;;  %949 = vperm.xlu0 %1235, %v922_v57  }
 0xf9d   :  { %1236 = vset.pattern.permute.xlu1 %v1304_v24  ;;  %1238 = vset.pattern.permute.xlu0 %v1311_v31 }
 0xf9e   :  { %954 = vperm.xlu1 %1236, %v922_v57   ;;  %964 = vperm.xlu0 %1238, %v922_v57  }
 0xfa2   :  { %1237 = vset.pattern.permute.xlu1 %v1309_v29  ;;  %1241 = vset.pattern.permute.xlu0 %v1313_v33 }
 0xfa3   :  { %959 = vperm.xlu1 %1237, %v922_v57   ;;  %979 = vperm.xlu0 %1241, %v922_v57  }
 0xfa7   :  { %1239 = vset.pattern.permute.xlu1 %v1790_v1  ;;  %1244 = vset.pattern.permute.xlu0 %v1791_v23 }
 0xfa8   :  { %969 = vperm.xlu1 %1239, %v922_v57   ;;  %994 = vperm.xlu0 %1244, %v922_v57  }
 0xfac   :  { %1240 = vset.pattern.permute.xlu1 %v1789_v56  ;;  %1247 = vset.pattern.permute.xlu0 %v1787_v12 }
 0xfad   :  { %974 = vperm.xlu1 %1240, %v922_v57   ;;  %1009 = vperm.xlu0 %1247, %v922_v57  }
 0xfb1   :  { %1242 = vset.pattern.permute.xlu1 %v1788_v30 }
 0xfb2   :  { %984 = vperm.xlu1 %1242, %v922_v57  }
 0xfb6   :  { %1243 = vset.pattern.permute.xlu1 %v1786_v52 }
 0xfb7   :  { %989 = vperm.xlu1 %1243, %v922_v57  }
 0xfbb   :  { %1245 = vset.pattern.permute.xlu1 %v1782_v18 }
 0xfbc   :  { %999 = vperm.xlu1 %1245, %v922_v57  }
 0xfc0   :  { %1246 = vset.pattern.permute.xlu1 %v1783_v58 }
 0xfc1   :  { %1004 = vperm.xlu1 %1246, %v922_v57  }
0x1013   :  { %v940_v24 = vpop.permute.xlu1 %939  ;;  %v935_v31 = vpop.permute.xlu0 %934 }
0x1014   :  { %v937_v32 = vmul.f32 %v935_v31, %v1425_v8  ;;  %v942_v55 = vmul.f32 %v940_v24, %v1427_v9 }
0x1018   :  { %v945_v25 = vpop.permute.xlu1 %944  ;;  %v950_v12 = vpop.permute.xlu0 %949 }
0x1019   :  { %v947_v58 = vmul.f32 %v945_v25, %v1412_v61  ;;  %v952_v17 = vmul.f32 %v950_v12, %v1414_v62 }
0x101b   :  { %v1014_v38 = vadd.f32 %v947_v58, %v942_v55 }
0x101d   :  { %v955_v27 = vpop.permute.xlu1 %954  ;;  %v965_v30 = vpop.permute.xlu0 %964 }
0x101e   :  { %v957_v51 = vmul.f32 %v955_v27, %v1429_v10  ;;  %v967_v37 = vmul.f32 %v965_v30, %v1410_v60  ;;  %v931_v10 = vadd.f32 %v1646_v48, %v930_v49 }
0x1020   :  { %v1015_v60 = vadd.f32 %v957_v51, %v952_v17 }
0x1022   :  { %v960_v29 = vpop.permute.xlu1 %959  ;;  %v980_v52 = vpop.permute.xlu0 %979 }
0x1023   :  { %v962_v23 = vmul.f32 %v960_v29, %v1420_v5  ;;  %v982_v5 = vmul.f32 %v980_v52, %v1422_v6  ;;  %v1013_v6 = vadd.f32 %v937_v32, %v931_v10 }
0x1025   :  { %v1016_v54 = vadd.f32 %v967_v37, %v962_v23 }
0x1027   :  { %v970_v33 = vpop.permute.xlu1 %969  ;;  %v995_v41 = vpop.permute.xlu0 %994  ;;  %v1022_v2 = vadd.f32 %v1016_v54, %v1015_v60 }
0x1028   :  { %v997_v28 = vmul.f32 %v995_v41, %v1436_v14  ;;  %v972_v8 = vmul.f32 %v970_v33, %v1440_v21 }
0x102c   :  { %v975_v56 = vpop.permute.xlu1 %974  ;;  %v1010_v42 = vpop.permute.xlu0 %1009 }
0x102d   :  { %v977_v0 = vmul.f32 %v975_v56, %v1434_v13  ;;  %v1012_v14 = vmul.f32 %v1010_v42, %v1461_v16  ;;  %v1106_v16 = vld [vmem:[%s1759_s4] ss:$0 sm:$0xff] }
0x102f   :  { %v1017_v63 = vadd.f32 %v977_v0, %v972_v8 }
0x1031   :  { %v985_v19 = vpop.permute.xlu1 %984 }
0x1032   :  { %v987_v46 = vmul.f32 %v985_v19, %v1431_v11 }
0x1034   :  { %v1018_v53 = vadd.f32 %v987_v46, %v982_v5 }
0x1036   :  { %v990_v1 = vpop.permute.xlu1 %989  ;;  %v1023_v7 = vadd.f32 %v1018_v53, %v1017_v63 }
0x1037   :  { %v992_v61 = vmul.f32 %v990_v1, %v1446_v47  ;;  %v1021_v47 = vadd.f32 %v1014_v38, %v1013_v6 }
0x1039   :  { %v1019_v13 = vadd.f32 %v997_v28, %v992_v61  ;;  %v1025_v26 = vadd.f32 %v1022_v2, %v1021_v47 }
0x103b   :  { %v1000_v18 = vpop.permute.xlu1 %999 }
0x103c   :  { %v1002_v9 = vmul.f32 %v1000_v18, %v1442_v22 }
0x1040   :  { %v1005_v11 = vpop.permute.xlu1 %1004 }
0x1041   :  { %v1007_v62 = vmul.f32 %v1005_v11, %v1448_v44 }
0x1043   :  { %v1020_v45 = vadd.f32 %v1007_v62, %v1002_v9 }
0x1045   :  { %v1024_v48 = vadd.f32 %v1020_v45, %v1019_v13 }
0x1047   :  { %v1026_v15 = vadd.f32 %v1024_v48, %v1023_v7 }
0x1049   :  { %v1027_v35 = vadd.f32 %v1026_v15, %v1025_v26 }
0x104b   :  { %v1028_v21 = vadd.f32 %v1027_v35, %v1012_v14 }
0x104d   :  { %v1104_v59 = vmul.f32 -1.442695, %v1028_v21 }
0x104f   :  { %1290 = vpow2.f32 %v1104_v59 }
0x1059   :  { %v1291_v22 = vpop.eup %1290 }
0x105a   :  { %v1032_v40 = vadd.f32 1.0, %v1291_v22 }
0x105c   :  { %1292 = vrcp.f32 %v1032_v40 }
0x1066   :  { %v1293_v44 = vpop.eup %1292 }
0x1067   :  { %v1035_v34 = vmul.f32 2.0, %v1293_v44  ;;  %v1037_v43 = vmul.f32 %v1293_v44, %v1706_v4  ;;  %v1073_v4 = vstv %s1760_s5 }
0x1069   :  { %v1105_v39 = vadd.f32 -1.0, %v1035_v34 }
0x106b   :  { %1039 = vrot.lane.b32.xlu1 %v1105_v39, %s1299_s27  ;;  %s1319_s27 = smov 80  }
0x10dd   :  { %v1040_v3 = vpop.permute.xlu1 %1039 }
0x10de   :  { %v1042_v36 = vmul.f32 %v1293_v44, %v1040_v3 }
0x10e0   :  { %1044 = vrot.lane.b32.xlu1 %v1042_v36, %s1300_s30 }
0x10e4   :  { %1060 = vrot.lane.b32.xlu1 %v1106_v16, %s1318_s26 }
0x1152   :  { %v1045_v50 = vpop.permute.xlu1 %1044 }
0x1153   :  { %v1047_v57 = vadd.f32 %v1045_v50, %v1037_v43 }
0x1155   :  { %1294 = vtanh.f32 %v1047_v57 }
0x1156   :  { %v1061_v25 = vpop.permute.xlu1 %1060 }
0x115f   :  { %v1295_v20 = vpop.eup %1294 }
0x1160   :  { %1050 = vrot.lane.b32.xlu0 %v1295_v20, %s1303_s7 }
0x11d2   :  { %v1051_v24 = vpop.permute.xlu0 %1050 }
0x11d3   :  { %v1053_v27 = vmul.f32 %v1293_v44, %v1051_v24 }
0x11d5   :  { %v1063_v29 = vmul.f32 %v1061_v25, %v1053_v27 }
0x11d7   :  { %1065 = vrot.lane.b32.xlu0 %v1063_v29, %s1319_s27 }
0x1249   :  { %v1066_v31 = vpop.permute.xlu0 %1065 }
0x124a   :  { %v1069_v33 = vsel %vm1068_vm0, %v1066_v31, 0.0 }
0x124b   :  { %1070 = vadd.xlane.f32.xlu1 %v1069_v33 }
0x12d8   :  { %v1071_v12 = vpop.xlane.xlu1 %1070 }
0x12d9   :  { %v1074_v56 = vadd.f32 %v1073_v4, %v1071_v12 }
0x12db   :  { %1076 = vst.msk [vmem:[%s1761_s6] sm:$0x3] %vm1075_vm1, %v1074_v56 }

</bundles_post_ra>
